<compile_context>
chip_gen: v5e
topology: v5e:2x2
jax: 0.10.0
libtpu: 0.0.40
codegen_flags: <defaults>
</compile_context>

<pallas_src>
import numpy as np
import jax
import jax.numpy as jnp
from jax import lax
from jax.experimental import pallas as pl
from jax.experimental.pallas import tpu as pltpu

EPS = 1e-16


# --------------------------------------------------------------------------
# Host precompute mirroring the module's __init__ (pure numpy glue)
# --------------------------------------------------------------------------
def compute_wigner_indices(order):
    wi = []
    for l in range(order):
        for i in range((2 * l + 1) ** 2):
            wi.append([
                l,
                l ** 2 + i // (2 * l + 1),
                l ** 2 + i % (2 * l + 1),
                (order - 1 - l + i // (2 * l + 1)) * (2 * order - 1)
                + (order - 1 - l + i % (2 * l + 1)),
            ])
    return np.array(wi, dtype=np.int32)


def compute_spherical_coords_and_masks(kernel_size):
    kc = (kernel_size - 1) // 2
    coords = np.zeros((kernel_size,) * 3 + (3,), dtype=np.float32)
    rad_list, masks = [], []
    t = (kernel_size - 1) // 2 + 1
    k_max = (t - 1) ** 2 * 3
    for i in range(kernel_size):
        for j in range(kernel_size):
            for k in range(kernel_size):
                i1, j1, k1 = i - kc, j - kc, k - kc
                if i1 == 0 and j1 == 0 and k1 == 0:
                    coords[i, j, k, 1] = 0.0
                    coords[i, j, k, 2] = 0.0
                    coords[i, j, k, 0] = 0.0 if kernel_size - 1 == 0 else -1.0
                else:
                    r2 = i1 ** 2 + j1 ** 2 + k1 ** 2
                    coords[i, j, k, 0] = 2.0 * r2 / k_max - 1.0
                    coords[i, j, k, 1] = np.arctan2(np.sqrt(i1 ** 2 + j1 ** 2), k1)
                    coords[i, j, k, 2] = np.arctan2(j1, i1)
                if coords[i, j, k, 0] not in rad_list:
                    rad_list.append(coords[i, j, k, 0])
                    m = len(rad_list) - 1
                    masks.append(np.zeros((kernel_size,) * 3, dtype=np.float32))
                else:
                    m = rad_list.index(coords[i, j, k, 0])
                masks[m][i, j, k] = 1.0
    return coords, np.stack(masks[::-1], axis=0)


def real_spherical_harmonics(order, phi, theta):
    # Real spherical harmonics up to l=1 (order<=2). Shape (order^2, k, k, k).
    out = [np.full(theta.shape, 0.28209479177, dtype=np.float32)]
    if order >= 2:
        c = 0.48860251190
        out.append((c * np.sin(theta) * np.sin(phi)).astype(np.float32))
        out.append((c * np.cos(theta)).astype(np.float32))
        out.append((c * np.sin(theta) * np.cos(phi)).astype(np.float32))
    # TODO(synk): orders > 2 use ILPONet's spherical_harmonics helper (not provided here).
    return np.stack(out, axis=0)


def _round_up(x, m):
    return (x + m - 1) // m * m


def _choose_tile(total, max_tile, align=128):
    """Pick a tile size (multiple of `align`, <= max_tile) minimizing the zero
    padding of `total`, preferring larger tiles on ties. Returns (tile, padded)."""
    total_aligned = _round_up(total, align)
    if total_aligned <= max_tile:
        return total_aligned, total_aligned
    best_tile, best_padded = align, _round_up(total, align)
    for tile in range(max_tile, align - 1, -align):
        padded = _round_up(total, tile)
        if padded < best_padded or (padded == best_padded and tile > best_tile):
            best_tile, best_padded = tile, padded
    return best_tile, best_padded


# --------------------------------------------------------------------------
# Fused Pallas kernel: conv matmul (K-tiled f32 accumulator, bf16 operands) +
# SO(3) projection + ReLU + weighted-ratio pooling + bias, all in one pass.
# --------------------------------------------------------------------------
def _make_fused_kernel(c_out, s_pad, mln_pad, tile_p):
    def kernel(g_ref, w2_ref, bias_ref, kmat_ref, patch_ref, out_ref, acc_ref):
        kstep = pl.program_id(2)

        @pl.when(kstep == 0)
        def _():
            acc_ref[...] = jnp.zeros_like(acc_ref)

        # Conv tile on the MXU: bf16 operands, f32 accumulation in VMEM.
        # (Cout*S_pad, tile_k) @ (tile_k, tile_p) -> lane-dense f32 accumulator.
        acc_ref[...] += jnp.dot(kmat_ref[...], patch_ref[...],
                                preferred_element_type=jnp.float32)

        @pl.when(kstep == pl.num_programs(2) - 1)
        def _():
            g = g_ref[...]          # (MLN_pad, S_pad)   SO(3) basis grid (f32)
            w2 = w2_ref[...]        # (8, 2*MLN_pad)     row0: den weights | row1: num weights
            row_ids = lax.broadcasted_iota(jnp.int32, (c_out, tile_p), 0)

            def per_cout(c, out_acc):
                # Dynamic, sublane-aligned slice of this channel's S_pad slab.
                start = pl.multiple_of(c * s_pad, 8)
                conv_c = acc_ref[pl.ds(start, s_pad), :]              # (S_pad, tile_p)
                # SO(3) projection on the MXU + ReLU (f32).
                v = jnp.maximum(
                    jnp.dot(g, conv_c, preferred_element_type=jnp.float32), 0.0)
                # den & num in ONE MXU matmul: stack [v ; v*v] along sublanes.
                vv = jnp.concatenate([v, v * v], axis=0)              # (2*MLN_pad, tile_p)
                dn = jnp.dot(w2, vv, preferred_element_type=jnp.float32)
                den = dn[0:1, :]
                num = dn[1:2, :]
                row = num * pl.reciprocal(den + EPS, approx=True) + bias_ref[c]
                # Scatter the row into its channel slot (no dynamic stores needed).
                return out_acc + jnp.where(row_ids == c, row, 0.0)

            out_ref[...] = lax.fori_loop(
                0, c_out, per_cout, jnp.zeros((c_out, tile_p), jnp.float32))
    return kernel


def fused_conv_so3_pool(patches, kmat, g_pad, w2, bias, c_out, s_pad, mln_pad,
                        tile_p, tile_k):
    B, K_pad, Psp_pad = patches.shape
    grid = (B, Psp_pad // tile_p, K_pad // tile_k)
    kernel = _make_fused_kernel(c_out, s_pad, mln_pad, tile_p)
    return pl.pallas_call(
        kernel,
        out_shape=jax.ShapeDtypeStruct((B, c_out, Psp_pad), jnp.float32),
        grid=grid,
        in_specs=[
            pl.BlockSpec((mln_pad, s_pad), lambda b, p, k: (0, 0)),           # G (resident)
            pl.BlockSpec((8, 2 * mln_pad), lambda b, p, k: (0, 0)),           # pooling weights
            pl.BlockSpec(memory_space=pltpu.MemorySpace.SMEM),                # bias
            pl.BlockSpec((c_out * s_pad, tile_k), lambda b, p, k: (0, k)),    # kernel matrix
            pl.BlockSpec((None, tile_k, tile_p), lambda b, p, k: (b, k, p)),  # im2col patches
        ],
        out_specs=pl.BlockSpec((None, c_out, tile_p), lambda b, p, k: (b, 0, p)),
        scratch_shapes=[pltpu.VMEM((c_out * s_pad, tile_p), jnp.float32)],
        compiler_params=pltpu.CompilerParams(
            dimension_semantics=("parallel", "parallel", "arbitrary"),
            # 32 MiB is above v5e's 16 MiB scoped default and below v7x's 64 MiB
            # physical VMEM; the worst-case footprint here is <~10 MiB.
            vmem_limit_bytes=32 * 1024 * 1024),
    )(g_pad, w2, bias, kmat, patches)


# --------------------------------------------------------------------------
# Forward-pass glue (mirrors module.forward)
# --------------------------------------------------------------------------
def build_kernel_in_3d(weight, zeroweight, basis_functions, wigner_indices,
                       order, c_in, c_out, ks):
    zeroweight_ext = jnp.concatenate(
        [zeroweight[None, None],
         jnp.zeros((order ** 2 - 1, 1, c_in, c_out), weight.dtype)], axis=0)
    w_full = jnp.concatenate([zeroweight_ext, weight], axis=1)   # (order^2, R, Cin, Cout)
    w_g = w_full[wigner_indices[:, 1]]                            # (S, R, Cin, Cout)
    b_g = basis_functions[wigner_indices[:, 2]]                   # (S, R, k, k, k)
    k3d = jnp.einsum('lred,lrijk->ledijk', w_g, b_g)
    # Identical (quirky) reshape to the PyTorch module -> (S*Cout, Cin, ks, ks, ks).
    return k3d.reshape(-1, c_in, ks, ks, ks)


def im2col_3d(x, ks, stride, padding, dilation=1):
    # x: (B, C, D, H, W) -> patches (B, C*ks^3, Do*Ho*Wo); flattened spatial index
    # last so it lands on the lane dimension of the Pallas matmul.
    x = jnp.pad(x, ((0, 0), (0, 0),
                    (padding, padding), (padding, padding), (padding, padding)))
    B, C, D, H, W = x.shape
    eff = dilation * (ks - 1) + 1
    Do = (D - eff) // stride + 1
    Ho = (H - eff) // stride + 1
    Wo = (W - eff) // stride + 1
    cols = []
    for i in range(ks):
        for j in range(ks):
            for l in range(ks):
                sl = x[:, :,
                       i * dilation: i * dilation + stride * (Do - 1) + 1: stride,
                       j * dilation: j * dilation + stride * (Ho - 1) + 1: stride,
                       l * dilation: l * dilation + stride * (Wo - 1) + 1: stride]
                cols.append(sl)
    cols = jnp.stack(cols, axis=2)                  # (B, C, ks^3, Do, Ho, Wo)
    return cols.reshape(B, C * ks ** 3, Do * Ho * Wo), (Do, Ho, Wo)


def ilpo_forward(x, weight, zeroweight, bias, basis_functions, wigner_indices,
                 so3basisgrid, w_i, order, ks, stride=1, padding=0,
                 use_bf16=True):
    B, c_in = x.shape[0], x.shape[1]
    c_out = weight.shape[-1]
    S = wigner_indices.shape[0]
    M, L, Ng, _ = so3basisgrid.shape
    MLN = M * L * Ng
    K = c_in * ks ** 3
    mm_dtype = jnp.bfloat16 if use_bf16 else jnp.float32

    filters = build_kernel_in_3d(weight, zeroweight, basis_functions,
                                 wigner_indices, order, c_in, c_out, ks)

    # TODO(synk): im2col still materializes ks^3 x the input in HBM (now in bf16);
    #             an in-kernel halo-fetching gather (memory_space=pl.ANY + manual DMA)
    #             would remove that blowup for large inputs.
    patches, (Do, Ho, Wo) = im2col_3d(x.astype(mm_dtype), ks, stride, padding)
    Psp = Do * Ho * Wo

    # -------- tiling / padding choices --------
    s_pad = _round_up(S, 8)
    mln_pad = _round_up(MLN, 8)
    # Minimal-waste tiles: big lane tiles (>=512 when possible, capped at 2048 so the
    # footprint stays well inside v7x's 64 MiB VMEM), K tiled only as much as needed.
    tile_k, K_pad = _choose_tile(K, 512)
    tile_p, Psp_pad = _choose_tile(Psp, 2048)

    patches = jnp.pad(patches, ((0, 0), (0, K_pad - K), (0, Psp_pad - Psp)))

    # Kernel matrix, Cout-major then S so each Cout owns a contiguous S_pad slab.
    kmat = filters.reshape(S, c_out, K).transpose(1, 0, 2)        # (Cout, S, K)
    kmat = jnp.pad(kmat, ((0, 0), (0, s_pad - S), (0, K_pad - K)))
    kmat = kmat.reshape(c_out * s_pad, K_pad).astype(mm_dtype)

    g_pad = so3basisgrid.reshape(MLN, S).astype(jnp.float32)
    g_pad = jnp.pad(g_pad, ((0, mln_pad - MLN), (0, s_pad - S)))  # (MLN_pad, S_pad)

    # Fused pooling weights: row 0 hits v (denominator), row 1 hits v*v (numerator).
    wvec = jnp.broadcast_to(w_i[None, :, None], (M, L, Ng)).reshape(MLN)
    wvec = jnp.pad(wvec, (0, mln_pad - MLN))
    w2 = jnp.zeros((8, 2 * mln_pad), jnp.float32)
    w2 = w2.at[0, :mln_pad].set(wvec)
    w2 = w2.at[1, mln_pad:].set(wvec)

    bias_arr = (bias if bias is not None
                else jnp.zeros((c_out,), jnp.float32)).astype(jnp.float32)

    pooled = fused_conv_so3_pool(patches, kmat, g_pad, w2, bias_arr,
                                 c_out, s_pad, mln_pad, tile_p, tile_k)
    # Padded P lanes evaluate to `bias`, NOT zero: the slice below is load-bearing.
    return pooled[:, :, :Psp].reshape(B, c_out, Do, Ho, Wo)
    # TODO(synk): hardmax pooling branch not implemented (softmax is the module default).


# --------------------------------------------------------------------------
# Pure-JAX reference of the PyTorch forward (for correctness check only)
# --------------------------------------------------------------------------
def reference_forward(x, weight, zeroweight, bias, basis_functions, wigner_indices,
                      so3basisgrid, w_i, order, ks, stride=1, padding=0):
    B, c_in = x.shape[0], x.shape[1]
    c_out = weight.shape[-1]
    S = wigner_indices.shape[0]
    filters = build_kernel_in_3d(weight, zeroweight, basis_functions,
                                 wigner_indices, order, c_in, c_out, ks)
    conv = jax.lax.conv_general_dilated(
        x, filters, window_strides=(stride,) * 3,
        padding=[(padding, padding)] * 3,
        dimension_numbers=('NCDHW', 'OIDHW', 'NCDHW'))
    Do, Ho, Wo = conv.shape[2:]
    conv_r = conv.reshape(B, S, c_out, Do, Ho, Wo)
    so3 = jnp.einsum('bsdxyz,mlns->mlnbdxyz', conv_r, so3basisgrid)
    so3 = jnp.maximum(so3, 0.0)
    wi = w_i[None, :, None, None, None, None, None, None]
    den = (so3 * wi).sum(0, keepdims=True).sum(1, keepdims=True).sum(2, keepdims=True) + EPS
    w = so3 / den
    out = (so3 * w * wi).sum(0).sum(0).sum(0)
    if bias is not None:
        out = out + bias.reshape(1, -1, 1, 1, 1)
    return out


# --------------------------------------------------------------------------
if __name__ == "__main__":
    # Module config
    B, C_IN, C_OUT = 2, 4, 4
    KS = 3                    # kernel_size (odd)
    ORDER = 2                 # -> S = 1 + 9 = 10, order^2 = 4
    STRIDE, PADDING = 1, 1
    D = H = W = 8
    M_A, L_B, N_G = 6, 3, 6   # synthetic SO(3) grid (alpha, beta, gamma)

    # Host precompute (mirrors __init__)
    wigner_indices = compute_wigner_indices(ORDER)                  # (S, 4)
    coords, masks = compute_spherical_coords_and_masks(KS)          # (k,k,k,3), (R,k,k,k)
    R = masks.shape[0]
    sph_harm = real_spherical_harmonics(ORDER, coords[..., 2], coords[..., 1])
    if ORDER > 1:
        c = (KS - 1) // 2
        sph_harm[1:, c, c, c] = 0.0
    basis_functions = jnp.asarray(
        np.einsum('rijk,lijk->lrijk', masks, sph_harm), jnp.float32)  # (order^2, R, k,k,k)
    S = wigner_indices.shape[0]

    # Deterministic synthetic parameters / SO(3)-grid buffers (shapes per __init__)
    # TODO(synk): get_so3basisgrid0 / Wigner-D construction is an external ILPONet
    #             helper; replaced by deterministic synthetic tensors of correct shape.
    key = jax.random.PRNGKey(0)
    k1, k2, k3, k4, k5, k6 = jax.random.split(key, 6)
    x = jax.random.normal(k1, (B, C_IN, D, H, W), jnp.float32)
    weight = jax.random.normal(k2, (ORDER ** 2, R - 1, C_IN, C_OUT), jnp.float32)
    zeroweight = jax.random.normal(k3, (C_IN, C_OUT), jnp.float32)
    bias = 0.1 * jax.random.normal(k4, (C_OUT,), jnp.float32)
    so3basisgrid = jax.random.normal(k5, (M_A, L_B, N_G, S), jnp.float32)
    w_i = jax.random.uniform(k6, (L_B,), jnp.float32, 0.1, 1.0)

    out = ilpo_forward(x, weight, zeroweight, bias, basis_functions, wigner_indices,
                       so3basisgrid, w_i, ORDER, KS, STRIDE, PADDING)
    out = jax.block_until_ready(out)

    ref = reference_forward(x, weight, zeroweight, bias, basis_functions, wigner_indices,
                            so3basisgrid, w_i, ORDER, KS, STRIDE, PADDING)
    ref = jax.block_until_ready(ref)

    assert out.shape == (B, C_OUT, D, H, W), out.shape
    # Tolerance accounts for bf16 conv operands (f32 accumulation / f32 epilogue).
    np.testing.assert_allclose(np.asarray(out), np.asarray(ref), rtol=2e-2, atol=2e-2)
    print("KERNEL_OK")
</pallas_src>

<mosaic_0001>
module attributes {stable_mosaic.version = 11 : i64} {
  func.func @kernel(%arg0: i32, %arg1: i32, %arg2: i32, %arg3: memref<112x16xf32, #tpu.memory_space<vmem>>, %arg4: memref<8x224xf32, #tpu.memory_space<vmem>>, %arg5: memref<4xf32, #tpu.memory_space<smem>>, %arg6: memref<64x128xbf16, #tpu.memory_space<vmem>>, %arg7: memref<1x128x512xbf16, #tpu.memory_space<vmem>>, %arg8: memref<1x4x512xf32, #tpu.memory_space<vmem>>, %arg9: memref<64x512xf32, #tpu.memory_space<vmem>>) attributes {dimension_semantics = [#tpu.dimension_semantics<parallel>, #tpu.dimension_semantics<parallel>, #tpu.dimension_semantics<arbitrary>], iteration_bounds = array<i64: 2, 1, 1>, scalar_prefetch = 0 : i64, scratch_operands = 1 : i64, tpu.core_type = #tpu.core_type<tc>, window_params = [{pipeline_mode = #tpu.pipeline_mode<synchronous>, transform_indices = @transform_0, window_bounds = array<i64: 112, 16>}, {pipeline_mode = #tpu.pipeline_mode<synchronous>, transform_indices = @transform_1, window_bounds = array<i64: 8, 224>}, {transform_indices = @transform_2, window_bounds = array<i64: 4>}, {transform_indices = @transform_3, window_bounds = array<i64: 64, 128>}, {transform_indices = @transform_4, window_bounds = array<i64: 1, 128, 512>}, {transform_indices = @transform_5, window_bounds = array<i64: 1, 4, 512>}]} {
    %c0_i32 = arith.constant 0 : i32
    %0 = arith.cmpi eq, %arg2, %c0_i32 : i32
    %1 = arith.extui %0 : i1 to i32
    %c0_i32_0 = arith.constant 0 : i32
    %2 = arith.cmpi ne, %1, %c0_i32_0 : i32
    scf.if %2 {
      %cst_11 = arith.constant 0.000000e+00 : f32
      %13 = vector.broadcast %cst_11 : f32 to vector<64x512xf32>
      %c0_12 = arith.constant 0 : index
      %c0_13 = arith.constant 0 : index
      %14 = vector.load %arg9[%c0_12, %c0_13] : memref<64x512xf32, #tpu.memory_space<vmem>>, vector<64x512xf32>
      tpu.vector_store %arg9[%c0_12, %c0_13], %13 {strides = array<i32>} : memref<64x512xf32, #tpu.memory_space<vmem>>, vector<64x512xf32>,
    } else {
    }
    %c0 = arith.constant 0 : index
    %c0_1 = arith.constant 0 : index
    %3 = vector.load %arg9[%c0, %c0_1] : memref<64x512xf32, #tpu.memory_space<vmem>>, vector<64x512xf32>
    %c0_2 = arith.constant 0 : index
    %c0_3 = arith.constant 0 : index
    %4 = vector.load %arg6[%c0_2, %c0_3] : memref<64x128xbf16, #tpu.memory_space<vmem>>, vector<64x128xbf16>
    %c0_4 = arith.constant 0 : index
    %c0_5 = arith.constant 0 : index
    %c0_6 = arith.constant 0 : index
    %5 = vector.load %arg7[%c0_4, %c0_5, %c0_6] : memref<1x128x512xbf16, #tpu.memory_space<vmem>>, vector<1x128x512xbf16>
    %6 = vector.shape_cast %5 : vector<1x128x512xbf16> to vector<128x512xbf16>
    %cst = arith.constant dense<0.000000e+00> : vector<64x512xf32>
    %7 = tpu.matmul %4, %6, %cst {dimension_numbers = #tpu.dot_dimension_numbers<[1], [0], [0], [1], [0, 0, 1, 1], [], []>} : vector<64x128xbf16>, vector<128x512xbf16>, vector<64x512xf32> -> vector<64x512xf32>
    %8 = arith.addf %3, %7 : vector<64x512xf32>
    %c0_7 = arith.constant 0 : index
    %c0_8 = arith.constant 0 : index
    %9 = vector.load %arg9[%c0_7, %c0_8] : memref<64x512xf32, #tpu.memory_space<vmem>>, vector<64x512xf32>
    tpu.vector_store %arg9[%c0_7, %c0_8], %8 {strides = array<i32>} : memref<64x512xf32, #tpu.memory_space<vmem>>, vector<64x512xf32>,
    %c0_i32_9 = arith.constant 0 : i32
    %10 = arith.cmpi eq, %arg2, %c0_i32_9 : i32
    %11 = arith.extui %10 : i1 to i32
    %c0_i32_10 = arith.constant 0 : i32
    %12 = arith.cmpi ne, %11, %c0_i32_10 : i32
    scf.if %12 {
      %c0_11 = arith.constant 0 : index
      %c0_12 = arith.constant 0 : index
      %13 = vector.load %arg3[%c0_11, %c0_12] : memref<112x16xf32, #tpu.memory_space<vmem>>, vector<112x16xf32>
      %c0_13 = arith.constant 0 : index
      %c0_14 = arith.constant 0 : index
      %14 = vector.load %arg4[%c0_13, %c0_14] : memref<8x224xf32, #tpu.memory_space<vmem>>, vector<8x224xf32>
      %15 = tpu.iota {dimensions = array<i32: 0>} : vector<4x512xi32>
      %cst_15 = arith.constant 0.000000e+00 : f32
      %16 = vector.broadcast %cst_15 : f32 to vector<4x512xf32>
      %c0_i32_16 = arith.constant 0 : i32
      %c4_i32 = arith.constant 4 : i32
      %17 = arith.addi %c0_i32_16, %c4_i32 : i32
      %c1_i32 = arith.constant 1 : i32
      %18 = scf.for %arg10 = %c0_i32_16 to %17 step %c1_i32 iter_args(%arg11 = %16) -> (vector<4x512xf32>)  : i32 {
        %c16_i32 = arith.constant 16 : i32
        %22 = arith.muli %arg10, %c16_i32 : i32
        %23 = tpu.assume_multiple %22, 8 : i32
        %24 = arith.index_cast %23 : i32 to index
        %c0_21 = arith.constant 0 : index
        %25 = vector.load %arg9[%24, %c0_21] : memref<64x512xf32, #tpu.memory_space<vmem>>, vector<16x512xf32>
        %cst_22 = arith.constant dense<0.000000e+00> : vector<112x512xf32>
        %26 = tpu.matmul %13, %25, %cst_22 {dimension_numbers = #tpu.dot_dimension_numbers<[1], [0], [0], [1], [0, 0, 1, 1], [], []>} : vector<112x16xf32>, vector<16x512xf32>, vector<112x512xf32> -> vector<112x512xf32>
        %cst_23 = arith.constant 0.000000e+00 : f32
        %27 = vector.broadcast %cst_23 : f32 to vector<112x512xf32>
        %28 = arith.maximumf %26, %27 : vector<112x512xf32>
        %29 = arith.mulf %28, %28 : vector<112x512xf32>
        %30 = tpu.concatenate %28, %29 in 0 : vector<112x512xf32>, vector<112x512xf32> -> vector<224x512xf32>
        %cst_24 = arith.constant dense<0.000000e+00> : vector<8x512xf32>
        %31 = tpu.matmul %14, %30, %cst_24 {dimension_numbers = #tpu.dot_dimension_numbers<[1], [0], [0], [1], [0, 0, 1, 1], [], []>} : vector<8x224xf32>, vector<224x512xf32>, vector<8x512xf32> -> vector<8x512xf32>
        %32 = vector.extract_strided_slice %31 {offsets = [0, 0], sizes = [1, 512], strides = [1, 1]} : vector<8x512xf32> to vector<1x512xf32>
        %33 = vector.extract_strided_slice %31 {offsets = [1, 0], sizes = [1, 512], strides = [1, 1]} : vector<8x512xf32> to vector<1x512xf32>
        %cst_25 = arith.constant 1.000000e-16 : f32
        %34 = vector.broadcast %cst_25 : f32 to vector<1x512xf32>
        %35 = arith.addf %32, %34 : vector<1x512xf32>
        %36 = tpu.reciprocal %35 {approx = true} : vector<1x512xf32> -> vector<1x512xf32>
        %37 = arith.mulf %33, %36 : vector<1x512xf32>
        %38 = arith.index_cast %arg10 : i32 to index
        %39 = memref.load %arg5[%38] : memref<4xf32, #tpu.memory_space<smem>>
        %40 = vector.broadcast %39 : f32 to vector<1x512xf32>
        %41 = arith.addf %37, %40 : vector<1x512xf32>
        %42 = vector.broadcast %arg10 : i32 to vector<4x512xi32>
        %43 = arith.cmpi eq, %15, %42 : vector<4x512xi32>
        %cst_26 = arith.constant 0.000000e+00 : f32
        %44 = vector.shape_cast %41 : vector<1x512xf32> to vector<1x512xf32>
        %45 = vector.broadcast %44 : vector<1x512xf32> to vector<4x512xf32>
        %46 = vector.broadcast %cst_26 : f32 to vector<4x512xf32>
        %47 = arith.select %43, %45, %46 : vector<4x512xi1>, vector<4x512xf32>
        %48 = arith.addf %arg11, %47 : vector<4x512xf32>
        scf.yield %48 : vector<4x512xf32>
      }
      %c4_i32_17 = arith.constant 4 : i32
      %c0_18 = arith.constant 0 : index
      %c0_19 = arith.constant 0 : index
      %c0_20 = arith.constant 0 : index
      %19 = vector.load %arg8[%c0_18, %c0_19, %c0_20] : memref<1x4x512xf32, #tpu.memory_space<vmem>>, vector<1x4x512xf32>
      %20 = vector.shape_cast %19 : vector<1x4x512xf32> to vector<4x512xf32>
      %21 = vector.shape_cast %18 : vector<4x512xf32> to vector<1x4x512xf32>
      tpu.vector_store %arg8[%c0_18, %c0_19, %c0_20], %21 {strides = array<i32>} : memref<1x4x512xf32, #tpu.memory_space<vmem>>, vector<1x4x512xf32>,
    } else {
    }
    return
  }
  func.func @transform_0(%arg0: i32, %arg1: i32, %arg2: i32) -> (i32, i32) {
    %c0_i32 = arith.constant 0 : i32
    %c0_i32_0 = arith.constant 0 : i32
    %c0_i32_1 = arith.constant 0 : i32
    return %c0_i32, %c0_i32_0 : i32, i32
  }
  func.func @transform_1(%arg0: i32, %arg1: i32, %arg2: i32) -> (i32, i32) {
    %c0_i32 = arith.constant 0 : i32
    %c0_i32_0 = arith.constant 0 : i32
    %c0_i32_1 = arith.constant 0 : i32
    return %c0_i32, %c0_i32_0 : i32, i32
  }
  func.func @transform_2(%arg0: i32, %arg1: i32, %arg2: i32) -> i32 {
    %c0_i32 = arith.constant 0 : i32
    %c0_i32_0 = arith.constant 0 : i32
    return %c0_i32 : i32
  }
  func.func @transform_3(%arg0: i32, %arg1: i32, %arg2: i32) -> (i32, i32) {
    %c0_i32 = arith.constant 0 : i32
    %c0_i32_0 = arith.constant 0 : i32
    return %c0_i32, %arg2 : i32, i32
  }
  func.func @transform_4(%arg0: i32, %arg1: i32, %arg2: i32) -> (i32, i32, i32) {
    %c0_i32 = arith.constant 0 : i32
    return %arg0, %arg2, %arg1 : i32, i32, i32
  }
  func.func @transform_5(%arg0: i32, %arg1: i32, %arg2: i32) -> (i32, i32, i32) {
    %c0_i32 = arith.constant 0 : i32
    %c0_i32_0 = arith.constant 0 : i32
    return %arg0, %c0_i32, %arg1 : i32, i32, i32
  }
}

</mosaic_0001>

<bundles_post_ra>
// kernel: tpu_custom_call.1
= control target key start
LH: loop header
LB: loop body
LE: loop exit
PB: predicated region body
PF: predicated region fallthrough
CT: control target
= control target key end

     0   :  { %s2848_s0 = inlined_call_operand.vmem [shape: f32[112,16], index: 0, kind: input, shape index: {}]   ;;  %s2849_s1 = inlined_call_operand.vmem [shape: f32[8,224], index: 1, kind: input, shape index: {}]   ;;  %s2850_s2 = inlined_call_operand.vmem [shape: f32[4], index: 2, kind: input, shape index: {}]   ;;  %s2851_s3 = inlined_call_operand.vmem [shape: bf16[64,128], index: 3, kind: input, shape index: {}]   ;;  %s2852_s4 = inlined_call_operand.hbm [shape: bf16[2,128,512], index: 4, kind: input, shape index: {}]   ;;  %s2853_s5 = inlined_call_operand.hbm [shape: f32[2,4,512], index: 5, kind: output, shape index: {}]  }
   0x1   :  { %2873 = sst [smem:[#allocation36_spill]] %s2850_s2 }
   0x2   :  { %10 = vsyncpa [#allocation6], 0 }
   0x3   :  { %11 = vsyncpa [#allocation4], 0 }
   0x4   :  { %13 = vsyncpa [#allocation4 + $0x1], 0 }
   0x5   :  { %14 = vsyncpa [#allocation5], 0 }
   0x6   :  { %16 = vsyncpa [#allocation5 + $0x1], 0  ;;  %s2186_s18 = smov 0   ;;  %s2188_s19 = smov 0  }
   0x7   :  { %s2190_s20 = smov 0   ;;  %s2192_s21 = smov 0  }
   0x8   :  { %s2194_s22 = smov 0   ;;  %s2196_s23 = smov 0  }
   0x9 LB: > { %2874 = sst [smem:[#allocation12_spill]] %s2131_s23  ;;  %s1592_s24 = sadd.s32 4294967295, %s2131_s23   ;;  %s2131_s23 = sphi %s2196_s23, %s22_s23   ;;  %s2127_s22 = sphi %s2194_s22, %s2940_s22   ;;  %s2123_s21 = sphi %s2192_s21, %s2939_s21   ;;  %s2119_s20 = sphi %s2190_s20, %s2938_s20   ;;  %s2115_s19 = sphi %s2188_s19, %s2937_s19   ;;  %s2111_s18 = sphi %s2186_s18, %s2936_s18  }
   0xa   : > { %s1593_s25 = sadd.s32 4294967294, %s2131_s23   ;;  %s141_s26 = sadd.s32 1, %s2119_s20 }
   0xb   : > { %p148_p0 = scmp.ne.s32.totalorder %s2119_s20, %s2115_s19  ;;  %p149_p1 = scmp.eq.s32.totalorder %s2131_s23, 0 }
   0xc   : > { %p154_p2 = scmp.ne.s32.totalorder %s2115_s19, %s2111_s18  ;;  %p2224_p3 = scmp.eq.s32.totalorder %s1592_s24, 0 }
   0xd   : > { %p180_p4 = scmp.eq.s32.totalorder %s1592_s24, 1  ;;  %p2228_p5 = por %p149_p1, %p148_p0 }
   0xe   : > { %p186_p6 = scmp.eq.s32.totalorder %s1593_s25, 1  ;;  %p2234_p7 = por %p2224_p3, %p154_p2 }
   0xf   : > { %p2238_p8 = por %p180_p4, %p148_p0  ;;  %p1594_p10 = scmp.ge.s32.totalorder %s2131_s23, 1 }
  0x10   : > { %p2242_p9 = por %p186_p6, %p154_p2  ;;  %p193_p11 = scmp.lt.s32.totalorder %s2131_s23, 3 }
  0x11   : > { %s2881_s2 = sld [smem:[#allocation36_spill]]  ;;  %p1597_p13 = scmp.ge.s32.totalorder %s2131_s23, 2 }
  0x12   : > { %s2879_s6 = scalar_select %p2242_p9, 1, 0 }
  0x13   : > { %p2251_p12 = pnand %p1594_p10, %p193_p11  ;;  %p1877_p0 = scmp.lt.s32.totalorder %s2131_s23, 2 }
  0x14   : > { %2880 = sst [smem:[#allocation13_spill]] %s2879_s6  ;;  %s41_s12 = sadd.s32 1, %s2127_s22 }
  0x15   : > { %p1864_p1 = pneg %p2251_p12  ;;  %p2261_p2 = pnand %p1877_p0, %p2228_p5 }
  0x16   : > { %p43_p6 = scmp.ge.s32.totalorder %s41_s12, 2  ;;  %s229_s13 = sand.u32 1, %s2119_s20  }
  0x17   : > { %s211_s9 = sshll.u32 %s2881_s2, 4  ;;  %p1865_p4 = pnand %p1864_p1, %p2224_p3  ;;  %s212_s9 = int_to_ptr.vmem [resolvable:$true] %s211_s9 }
  0x18   : > { %s2153_s14 = smov [#allocation3]   ;;  %s2942_s12 = smov (%p43_p6, %s41_s12), 0 }
  0x19   : > { %1867 = dma.vmem_to_smem (!%p1865_p4), %s212_s9, 16, %s2153_s14, [#allocation6]  }
  0x1a   : > { %s1598_s15 = sshll.u32 %s229_s13, 8  ;;  %s134_s16 = ssub.s32 %s2127_s22, %s2942_s12 }
  0x1b   : > { %p139_p10 = scmp.eq.s32.totalorder %s134_s16, 0  ;;  %s1817_s17 = sshll.u32 %s2127_s22, 8 }
  0x1c   : > { %s243_s28 = scalar_lea.hbm %s2852_s4, %s1817_s17  ;;  %s233_s7 = scalar_lea.vmem [#allocation7], %s1598_s15 }
  0x1d   : > { %s246_s8 = sshll.u32 %s233_s7, 4  ;;  %s244_s23 = sshll.u32 %s243_s28, 4  ;;  %s247_s8 = int_to_ptr.vmem [resolvable:$true] %s246_s8  ;;  %s245_s23 = int_to_ptr.hbm [resolvable:$true] %s244_s23 }
  0x1e   : > { %s2280_s2 = scalar_select %p139_p10, %s2119_s20, %s141_s26  }
  0x1f   : > { %s230_s9 = scalar_lea.sflag [#allocation4], %s229_s13  ;;  %s2154_s14 = smov 256  }
  0x20   : > { %s2155_s6 = smov 16   ;;  %258 = sbr.rel (%p2251_p12) target bundleno = 732 (0x2dc), region = 40 }
  0x21   : > { %1871 = dma.hbm_to_vmem [thread:$0]  (!%p2261_p2), %s245_s23, 4096, %s247_s8, %s230_s9, %s2154_s14, %s2154_s14, %s2155_s6  }
  0x25   : > { %2098 = dma.done.wait (%p2224_p3), [#allocation6], 16  }
  0x26   : > { %2100 = vsyncadd (%p2224_p3), [#allocation6], 4294967280  ;;  %s2291_s26 = sand.u32 1, %s2115_s19  }
  0x27   : > { %s1603_s13 = sshll.u32 %s2291_s26, 8  ;;  %s266_s15 = scalar_lea.sflag [#allocation4], %s2291_s26 }
  0x28   : > { %s2295_s16 = scalar_lea.vmem [#allocation7], %s1603_s13 }
  0x29   : > { %2102 = dma.done.wait (%p2234_p7), %s266_s15, 4096  }
  0x2a   : > { %2104 = vsyncadd (%p2234_p7), %s266_s15, 4294963200 }
  0x2b   : > { %275 = sfence }
  0x2c   : > { %s1604_s23 = sshll.u32 %s2291_s26, 4  ;;  %v1735_v0 = vld [vmem:[%s2295_s16 + $0xe0] sm:$0xf]  ;;  %v1852_v1 = vld [vmem:[%s2295_s16 + $0xec] sm:$0xf0]  ;;  %s2472_s7 = smov 0  }
  0x2d   : > { %v1736_v2 = vor.u32 %v1852_v1, %v1735_v0  ;;  %v1850_v3 = vld [vmem:[%s2295_s16 + $0xe4] sm:$0xf]  ;;  %v1737_v4 = vld [vmem:[%s2295_s16 + $0xf0] sm:$0xf0]  ;;  %v1743_v6 = vld [vmem:[%s2295_s16 + $0xe8] sm:$0xf] }
  0x2e   : > { %v1740_v5 = vor.u32 %v1850_v3, %v1737_v4  ;;  %v1853_v7 = vld [vmem:[%s2295_s16 + $0xf4] sm:$0xf0]  ;;  %v1851_v8 = vld [vmem:[%s2295_s16 + $0xec] sm:$0xf]  ;;  %v1745_v10 = vld [vmem:[%s2295_s16 + $0xf8] sm:$0xf0] }
  0x2f   : > { %601 = vmatpush.bf16.msra.mxu0 %v1736_v2  ;;  %v1744_v9 = vor.u32 %v1853_v7, %v1743_v6  ;;  %v1719_v11 = vld [vmem:[%s2295_s16 + $0xc0] sm:$0xf]  ;;  %v1848_v12 = vld [vmem:[%s2295_s16 + $0xcc] sm:$0xf0]  ;;  %v1748_v13 = vor.u32 %v1851_v8, %v1745_v10  ;;  %v1846_v15 = vld [vmem:[%s2295_s16 + $0xc4] sm:$0xf] }
  0x30   : > { %630 = vmatpush.bf16.msra.mxu1 %v1740_v5  ;;  %v1720_v14 = vor.u32 %v1848_v12, %v1719_v11  ;;  %v1721_v16 = vld [vmem:[%s2295_s16 + $0xd0] sm:$0xf0]  ;;  %v1727_v17 = vld [vmem:[%s2295_s16 + $0xc8] sm:$0xf]  ;;  %v1849_v19 = vld [vmem:[%s2295_s16 + $0xd4] sm:$0xf0] }
  0x31   : > { %659 = vmatpush.bf16.msra.mxu2 %v1744_v9  ;;  %v1724_v18 = vor.u32 %v1846_v15, %v1721_v16  ;;  %v1847_v20 = vld [vmem:[%s2295_s16 + $0xcc] sm:$0xf]  ;;  %v1729_v21 = vld [vmem:[%s2295_s16 + $0xd8] sm:$0xf0]  ;;  %688 = vmatpush.bf16.msra.mxu3 %v1748_v13  ;;  %v1728_v22 = vor.u32 %v1849_v19, %v1727_v17  ;;  %v1703_v24 = vld [vmem:[%s2295_s16 + $0xa0] sm:$0xf] }
  0x32   : > { %v1732_v23 = vor.u32 %v1847_v20, %v1729_v21  ;;  %v1844_v25 = vld [vmem:[%s2295_s16 + $0xac] sm:$0xf0]  ;;  %v1842_v26 = vld [vmem:[%s2295_s16 + $0xa4] sm:$0xf]  ;;  %v1705_v28 = vld [vmem:[%s2295_s16 + $0xb0] sm:$0xf0] }
  0x33   : > { %602 = vmatpush.bf16.msra.mxu0 %v1720_v14  ;;  %v1704_v27 = vor.u32 %v1844_v25, %v1703_v24  ;;  %v1711_v29 = vld [vmem:[%s2295_s16 + $0xa8] sm:$0xf]  ;;  %v1845_v30 = vld [vmem:[%s2295_s16 + $0xb4] sm:$0xf0]  ;;  %v1708_v31 = vor.u32 %v1842_v26, %v1705_v28  ;;  %v1843_v32 = vld [vmem:[%s2295_s16 + $0xac] sm:$0xf] }
  0x34   : > { %631 = vmatpush.bf16.msra.mxu1 %v1724_v18  ;;  %v1713_v33 = vld [vmem:[%s2295_s16 + $0xb8] sm:$0xf0]  ;;  %v1687_v34 = vld [vmem:[%s2295_s16 + $0x80] sm:$0xf]  ;;  %v1712_v35 = vor.u32 %v1845_v30, %v1711_v29  ;;  %v1840_v36 = vld [vmem:[%s2295_s16 + $0x8c] sm:$0xf0] }
  0x35   : > { %660 = vmatpush.bf16.msra.mxu2 %v1728_v22  ;;  %v1838_v37 = vld [vmem:[%s2295_s16 + $0x84] sm:$0xf]  ;;  %v1689_v38 = vld [vmem:[%s2295_s16 + $0x90] sm:$0xf0]  ;;  %689 = vmatpush.bf16.msra.mxu3 %v1732_v23  ;;  %v1716_v39 = vor.u32 %v1843_v32, %v1713_v33  ;;  %v1695_v40 = vld [vmem:[%s2295_s16 + $0x88] sm:$0xf]  ;;  %v1688_v42 = vor.u32 %v1840_v36, %v1687_v34 }
  0x36   : > { %v1841_v41 = vld [vmem:[%s2295_s16 + $0x94] sm:$0xf0]  ;;  %v1839_v43 = vld [vmem:[%s2295_s16 + $0x8c] sm:$0xf]  ;;  %v1697_v44 = vld [vmem:[%s2295_s16 + $0x98] sm:$0xf0]  ;;  %v1692_v45 = vor.u32 %v1838_v37, %v1689_v38 }
  0x37   : > { %603 = vmatpush.bf16.msra.mxu0 %v1704_v27  ;;  %v1671_v46 = vld [vmem:[%s2295_s16 + $0x60] sm:$0xf]  ;;  %v1836_v47 = vld [vmem:[%s2295_s16 + $0x6c] sm:$0xf0]  ;;  %v1696_v48 = vor.u32 %v1841_v41, %v1695_v40  ;;  %v1834_v49 = vld [vmem:[%s2295_s16 + $0x64] sm:$0xf]  ;;  %v1700_v51 = vor.u32 %v1839_v43, %v1697_v44 }
  0x38   : > { %632 = vmatpush.bf16.msra.mxu1 %v1708_v31  ;;  %v1673_v50 = vld [vmem:[%s2295_s16 + $0x70] sm:$0xf0]  ;;  %v1679_v52 = vld [vmem:[%s2295_s16 + $0x68] sm:$0xf]  ;;  %v1837_v53 = vld [vmem:[%s2295_s16 + $0x74] sm:$0xf0]  ;;  %v1672_v54 = vor.u32 %v1836_v47, %v1671_v46 }
  0x39   : > { %661 = vmatpush.bf16.msra.mxu2 %v1712_v35  ;;  %690 = vmatpush.bf16.msra.mxu3 %v1716_v39  ;;  %v1835_v55 = vld [vmem:[%s2295_s16 + $0x6c] sm:$0xf]  ;;  %v1681_v56 = vld [vmem:[%s2295_s16 + $0x78] sm:$0xf0]  ;;  %v1676_v57 = vor.u32 %v1834_v49, %v1673_v50  ;;  %v1655_v58 = vld [vmem:[%s2295_s16 + $0x40] sm:$0xf]  ;;  %v1680_v60 = vor.u32 %v1837_v53, %v1679_v52 }
  0x3a   : > { %v1832_v59 = vld [vmem:[%s2295_s16 + $0x4c] sm:$0xf0]  ;;  %v1830_v61 = vld [vmem:[%s2295_s16 + $0x44] sm:$0xf]  ;;  %v1657_v62 = vld [vmem:[%s2295_s16 + $0x50] sm:$0xf0]  ;;  %v1684_v63 = vor.u32 %v1835_v55, %v1681_v56 }
  0x3b   : > { %604 = vmatpush.bf16.msra.mxu0 %v1688_v42  ;;  %v1663_v0 = vld [vmem:[%s2295_s16 + $0x48] sm:$0xf]  ;;  %v1833_v1 = vld [vmem:[%s2295_s16 + $0x54] sm:$0xf0]  ;;  %v1656_v2 = vor.u32 %v1832_v59, %v1655_v58  ;;  %v1831_v3 = vld [vmem:[%s2295_s16 + $0x4c] sm:$0xf]  ;;  %v1660_v5 = vor.u32 %v1830_v61, %v1657_v62 }
  0x3c   : > { %633 = vmatpush.bf16.msra.mxu1 %v1692_v45  ;;  %v1665_v4 = vld [vmem:[%s2295_s16 + $0x58] sm:$0xf0]  ;;  %v1639_v6 = vld [vmem:[%s2295_s16 + $0x20] sm:$0xf]  ;;  %v1828_v7 = vld [vmem:[%s2295_s16 + $0x2c] sm:$0xf0]  ;;  %v1664_v8 = vor.u32 %v1833_v1, %v1663_v0 }
  0x3d   : > { %662 = vmatpush.bf16.msra.mxu2 %v1696_v48  ;;  %691 = vmatpush.bf16.msra.mxu3 %v1700_v51  ;;  %v1826_v9 = vld [vmem:[%s2295_s16 + $0x24] sm:$0xf]  ;;  %v1641_v10 = vld [vmem:[%s2295_s16 + $0x30] sm:$0xf0]  ;;  %v1668_v11 = vor.u32 %v1831_v3, %v1665_v4  ;;  %v1647_v12 = vld [vmem:[%s2295_s16 + $0x28] sm:$0xf]  ;;  %v1640_v14 = vor.u32 %v1828_v7, %v1639_v6 }
  0x3e   : > { %v1829_v13 = vld [vmem:[%s2295_s16 + $0x34] sm:$0xf0]  ;;  %v1827_v15 = vld [vmem:[%s2295_s16 + $0x2c] sm:$0xf]  ;;  %v1649_v16 = vld [vmem:[%s2295_s16 + $0x38] sm:$0xf0]  ;;  %v1644_v17 = vor.u32 %v1826_v9, %v1641_v10 }
  0x3f   : > { %605 = vmatpush.bf16.msra.mxu0 %v1672_v54  ;;  %v1623_v18 = vld [vmem:[%s2295_s16] sm:$0xf]  ;;  %v1824_v19 = vld [vmem:[%s2295_s16 + $0xc] sm:$0xf0]  ;;  %v1648_v20 = vor.u32 %v1829_v13, %v1647_v12  ;;  %v1822_v21 = vld [vmem:[%s2295_s16 + $0x4] sm:$0xf]  ;;  %v1652_v23 = vor.u32 %v1827_v15, %v1649_v16  ;;  %v800_v54 = vlaneseq }
  0x40   : > { %634 = vmatpush.bf16.msra.mxu1 %v1676_v57  ;;  %v1625_v22 = vld [vmem:[%s2295_s16 + $0x10] sm:$0xf0]  ;;  %v1631_v24 = vld [vmem:[%s2295_s16 + $0x8] sm:$0xf]  ;;  %v1825_v25 = vld [vmem:[%s2295_s16 + $0x14] sm:$0xf0]  ;;  %v1624_v26 = vor.u32 %v1824_v19, %v1623_v18 }
  0x41   : > { %663 = vmatpush.bf16.msra.mxu2 %v1680_v60  ;;  %692 = vmatpush.bf16.msra.mxu3 %v1684_v63  ;;  %v1823_v27 = vld [vmem:[%s2295_s16 + $0xc] sm:$0xf]  ;;  %v1633_v28 = vld [vmem:[%s2295_s16 + $0x18] sm:$0xf0]  ;;  %v1628_v29 = vor.u32 %v1822_v21, %v1625_v22  ;;  %v1632_v30 = vor.u32 %v1825_v25, %v1631_v24  ;;  %v1818_v32 = vld [vmem:[%s2851_s3] sm:$0xff]  ;;  %v2393_v58 = vshrl.u32 %v800_v54, 7 }
  0x42   : > { %v1636_v31 = vor.u32 %v1823_v27, %v1633_v28  ;;  %v1819_v33 = vld [vmem:[%s2851_s3 + $0x8] sm:$0xff]  ;;  %v1820_v34 = vld [vmem:[%s2851_s3 + $0x10] sm:$0xff]  ;;  %v1821_v35 = vld [vmem:[%s2851_s3 + $0x18] sm:$0xff]  ;;  %s2462_s28 = scalar_lea.vmem [#allocation8], %s1604_s23  ;;  %v2464_v22 = vmov 0.0   ;;  %v2468_v24 = vmov 0.0  }
  0x43   : > { %606 = vmatpush.bf16.msra.mxu0 %v1656_v2  ;;  %v2381_v55 = vld [vmem:[%s2848_s0] sm:$0xff]  ;;  %v2386_v56 = vld [vmem:[%s2848_s0 + $0x8] sm:$0xff]  ;;  %v2391_v57 = vld [vmem:[%s2848_s0 + $0x10] sm:$0xff]  ;;  %2887 = vst [vmem:[#allocation17_spill] sm:$0xff] %v2393_v58  ;;  %v2470_v25 = vmov 0.0  }
  0x44   : > { %635 = vmatpush.bf16.msra.mxu1 %v1660_v5  ;;  %2884 = vst [vmem:[#allocation14_spill] sm:$0xff] %v2381_v55  ;;  %v2398_v59 = vld [vmem:[%s2848_s0 + $0x18] sm:$0xff]  ;;  %v2403_v60 = vld [vmem:[%s2848_s0 + $0x20] sm:$0xff]  ;;  %v2408_v61 = vld [vmem:[%s2848_s0 + $0x28] sm:$0xff] }
  0x45   : > { %664 = vmatpush.bf16.msra.mxu2 %v1664_v8  ;;  %693 = vmatpush.bf16.msra.mxu3 %v1668_v11  ;;  %2885 = vst [vmem:[#allocation15_spill] sm:$0xff] %v2386_v56  ;;  %v2413_v62 = vld [vmem:[%s2848_s0 + $0x30] sm:$0xff]  ;;  %v2418_v63 = vld [vmem:[%s2848_s0 + $0x38] sm:$0xff]  ;;  %v2423_v0 = vld [vmem:[%s2848_s0 + $0x40] sm:$0xff] }
  0x46   : > { %2886 = vst [vmem:[#allocation16_spill] sm:$0xff] %v2391_v57  ;;  %v2428_v1 = vld [vmem:[%s2848_s0 + $0x48] sm:$0xff]  ;;  %v2433_v2 = vld [vmem:[%s2848_s0 + $0x50] sm:$0xff]  ;;  %v2438_v3 = vld [vmem:[%s2848_s0 + $0x58] sm:$0xff] }
  0x47   : > { %607 = vmatpush.bf16.msra.mxu0 %v1640_v14  ;;  %2888 = vst [vmem:[#allocation18_spill] sm:$0xff] %v2398_v59  ;;  %v2443_v6 = vld [vmem:[%s2848_s0 + $0x60] sm:$0xff]  ;;  %v2448_v7 = vld [vmem:[%s2848_s0 + $0x68] sm:$0xff] }
  0x48   : > { %636 = vmatpush.bf16.msra.mxu1 %v1644_v17  ;;  %2889 = vst [vmem:[#allocation19_spill] sm:$0xff] %v2403_v60  ;;  %v2453_v8 = vld [vmem:[%s2849_s1] sm:$0xff]  ;;  %v2458_v11 = vld [vmem:[%s2849_s1 + $0x8] sm:$0xff] }
  0x49   : > { %665 = vmatpush.bf16.msra.mxu2 %v1648_v20  ;;  %694 = vmatpush.bf16.msra.mxu3 %v1652_v23  ;;  %2890 = vst [vmem:[#allocation20_spill] sm:$0xff] %v2408_v61  ;;  %v2466_v23 = vmov 0.0  }
  0x4a   : > { %2891 = vst [vmem:[#allocation21_spill] sm:$0xff] %v2413_v62 }
  0x4b   : > { %608 = vmatpush.bf16.msra.mxu0 %v1624_v26  ;;  %2892 = vst [vmem:[#allocation22_spill] sm:$0xff] %v2418_v63 }
  0x4c   : > { %637 = vmatpush.bf16.msra.mxu1 %v1628_v29  ;;  %2893 = vst [vmem:[#allocation23_spill] sm:$0xff] %v2423_v0 }
  0x4d   : > { %666 = vmatpush.bf16.msra.mxu2 %v1632_v30  ;;  %695 = vmatpush.bf16.msra.mxu3 %v1636_v31  ;;  %2894 = vst [vmem:[#allocation24_spill] sm:$0xff] %v2428_v1 }
  0x4e   : > { %609 = vmatmul.bf16.vlgmr.msra.gmra.mxu0 %v1818_v32  ;;  %2895 = vst [vmem:[#allocation25_spill] sm:$0xff] %v2433_v2 }
  0x4f   : > { %638 = vmatmul.bf16.vlgmr.msra.gmra.mxu1 %v1818_v32  ;;  %2896 = vst [vmem:[#allocation26_spill] sm:$0xff] %v2438_v3 }
  0x50   : > { %667 = vmatmul.bf16.vlgmr.msra.gmra.mxu2 %v1818_v32  ;;  %696 = vmatmul.bf16.vlgmr.msra.gmra.mxu3 %v1818_v32  ;;  %2897 = vst [vmem:[#allocation27_spill] sm:$0xff] %v2443_v6 }
  0x51   : > { %2898 = vst [vmem:[#allocation28_spill] sm:$0xff] %v2448_v7 }
  0x52   : > { %2899 = vst [vmem:[#allocation29_spill] sm:$0xff] %v2453_v8 }
  0x53   : > { %2900 = vst [vmem:[#allocation30_spill] sm:$0xff] %v2458_v11 }
  0x5e   : > { %614 = vmatmul.bf16.gmra.mxu0 %v1819_v33 }
  0x5f   : > { %643 = vmatmul.bf16.gmra.mxu1 %v1819_v33 }
  0x60   : > { %672 = vmatmul.bf16.gmra.mxu2 %v1819_v33  ;;  %701 = vmatmul.bf16.gmra.mxu3 %v1819_v33 }
  0x6e   : > { %619 = vmatmul.bf16.gmra.mxu0 %v1820_v34 }
  0x6f   : > { %648 = vmatmul.bf16.gmra.mxu1 %v1820_v34 }
  0x70   : > { %677 = vmatmul.bf16.gmra.mxu2 %v1820_v34  ;;  %706 = vmatmul.bf16.gmra.mxu3 %v1820_v34 }
  0x7e   : > { %624 = vmatmul.bf16.gmra.mxu0 %v1821_v35 }
  0x7f   : > { %653 = vmatmul.bf16.gmra.mxu1 %v1821_v35 }
  0x80   : > { %682 = vmatmul.bf16.gmra.mxu2 %v1821_v35  ;;  %711 = vmatmul.bf16.gmra.mxu3 %v1821_v35 }
  0xcb   : > { %v610_v36 = vpop.f32.mrf.mxu0 }
  0xcc   : > { %v639_v37 = vpop.f32.mrf.mxu1  ;;  %749 = vst [vmem:[#allocation2] sm:$0xff] %v610_v36 }
  0xcd   : > { %750 = vst [vmem:[#allocation2 + $0x8] sm:$0xff] %v639_v37 }
  0xd3   : > { %v668_v38 = vpop.f32.mrf.mxu2  ;;  %v612_v39 = vpop.f32.mrf.mxu0 }
  0xd4   : > { %v697_v40 = vpop.f32.mrf.mxu3  ;;  %v641_v41 = vpop.f32.mrf.mxu1  ;;  %751 = vst [vmem:[#allocation2 + $0x10] sm:$0xff] %v668_v38 }
  0xd5   : > { %752 = vst [vmem:[#allocation2 + $0x18] sm:$0xff] %v697_v40 }
  0xd6   : > { %753 = vst [vmem:[#allocation2 + $0x20] sm:$0xff] %v612_v39 }
  0xd7   : > { %754 = vst [vmem:[#allocation2 + $0x28] sm:$0xff] %v641_v41 }
  0xdb   : > { %v670_v42 = vpop.f32.mrf.mxu2  ;;  %v615_v43 = vpop.f32.mrf.mxu0 }
  0xdc   : > { %v699_v44 = vpop.f32.mrf.mxu3  ;;  %v644_v45 = vpop.f32.mrf.mxu1  ;;  %755 = vst [vmem:[#allocation2 + $0x30] sm:$0xff] %v670_v42 }
  0xdd   : > { %756 = vst [vmem:[#allocation2 + $0x38] sm:$0xff] %v699_v44 }
  0xde   : > { %757 = vst [vmem:[#allocation2 + $0x40] sm:$0xff] %v615_v43 }
  0xdf   : > { %758 = vst [vmem:[#allocation2 + $0x48] sm:$0xff] %v644_v45 }
  0xe3   : > { %v673_v46 = vpop.f32.mrf.mxu2  ;;  %v617_v47 = vpop.f32.mrf.mxu0 }
  0xe4   : > { %v702_v48 = vpop.f32.mrf.mxu3  ;;  %v646_v49 = vpop.f32.mrf.mxu1  ;;  %759 = vst [vmem:[#allocation2 + $0x50] sm:$0xff] %v673_v46 }
  0xe5   : > { %760 = vst [vmem:[#allocation2 + $0x58] sm:$0xff] %v702_v48 }
  0xe6   : > { %761 = vst [vmem:[#allocation2 + $0x60] sm:$0xff] %v617_v47 }
  0xe7   : > { %762 = vst [vmem:[#allocation2 + $0x68] sm:$0xff] %v646_v49 }
  0xeb   : > { %v675_v50 = vpop.f32.mrf.mxu2  ;;  %v620_v51 = vpop.f32.mrf.mxu0 }
  0xec   : > { %v704_v52 = vpop.f32.mrf.mxu3  ;;  %v649_v53 = vpop.f32.mrf.mxu1  ;;  %763 = vst [vmem:[#allocation2 + $0x70] sm:$0xff] %v675_v50 }
  0xed   : > { %764 = vst [vmem:[#allocation2 + $0x78] sm:$0xff] %v704_v52 }
  0xee   : > { %765 = vst [vmem:[#allocation2 + $0x80] sm:$0xff] %v620_v51 }
  0xef   : > { %766 = vst [vmem:[#allocation2 + $0x88] sm:$0xff] %v649_v53 }
  0xf3   : > { %v678_v4 = vpop.f32.mrf.mxu2  ;;  %v622_v5 = vpop.f32.mrf.mxu0 }
  0xf4   : > { %v707_v9 = vpop.f32.mrf.mxu3  ;;  %v651_v10 = vpop.f32.mrf.mxu1  ;;  %767 = vst [vmem:[#allocation2 + $0x90] sm:$0xff] %v678_v4 }
  0xf5   : > { %768 = vst [vmem:[#allocation2 + $0x98] sm:$0xff] %v707_v9 }
  0xf6   : > { %769 = vst [vmem:[#allocation2 + $0xa0] sm:$0xff] %v622_v5 }
  0xf7   : > { %770 = vst [vmem:[#allocation2 + $0xa8] sm:$0xff] %v651_v10 }
  0xfb   : > { %v680_v12 = vpop.f32.mrf.mxu2  ;;  %v625_v13 = vpop.f32.mrf.mxu0 }
  0xfc   : > { %v709_v14 = vpop.f32.mrf.mxu3  ;;  %v654_v15 = vpop.f32.mrf.mxu1  ;;  %771 = vst [vmem:[#allocation2 + $0xb0] sm:$0xff] %v680_v12 }
  0xfd   : > { %772 = vst [vmem:[#allocation2 + $0xb8] sm:$0xff] %v709_v14 }
  0xfe   : > { %773 = vst [vmem:[#allocation2 + $0xc0] sm:$0xff] %v625_v13 }
  0xff   : > { %774 = vst [vmem:[#allocation2 + $0xc8] sm:$0xff] %v654_v15 }
 0x103   : > { %v683_v16 = vpop.f32.mrf.mxu2  ;;  %v627_v17 = vpop.f32.mrf.mxu0 }
 0x104   : > { %v712_v18 = vpop.f32.mrf.mxu3  ;;  %v656_v19 = vpop.f32.mrf.mxu1  ;;  %775 = vst [vmem:[#allocation2 + $0xd0] sm:$0xff] %v683_v16 }
 0x105   : > { %776 = vst [vmem:[#allocation2 + $0xd8] sm:$0xff] %v712_v18 }
 0x106   : > { %777 = vst [vmem:[#allocation2 + $0xe0] sm:$0xff] %v627_v17 }
 0x107   : > { %778 = vst [vmem:[#allocation2 + $0xe8] sm:$0xff] %v656_v19 }
 0x10b   : > { %v685_v20 = vpop.f32.mrf.mxu2 }
 0x10c   : > { %v714_v21 = vpop.f32.mrf.mxu3  ;;  %779 = vst [vmem:[#allocation2 + $0xf0] sm:$0xff] %v685_v20 }
 0x10d   : > { %780 = vst [vmem:[#allocation2 + $0xf8] sm:$0xff] %v714_v21 }
 0x10e LB: >> { %v2901_v63 = vld [vmem:[#allocation22_spill] sm:$0xff]  ;;  %v2902_v62 = vld [vmem:[#allocation21_spill] sm:$0xff]  ;;  %v2903_v61 = vld [vmem:[#allocation20_spill] sm:$0xff]  ;;  %2915 = vst [vmem:[#allocation31_spill] sm:$0xff] %v2135_v22  ;;  %s1749_s23 = sshll.u32 %s2151_s7, 4  ;;  %vm826_vm0 = vcmask 130048   ;;  %v2147_v25 = vphi %v2470_v25, %v2933_v25   ;;  %v2143_v24 = vphi %v2468_v24, %v2932_v24   ;;  %v2139_v23 = vphi %v2466_v23, %v2931_v23   ;;  %v2135_v22 = vphi %v2464_v22, %v2930_v22   ;;  %s2151_s7 = sphi %s2472_s7, %s807_s7  }
 0x10f   : >> { %v2904_v60 = vld [vmem:[#allocation19_spill] sm:$0xff]  ;;  %v2905_v59 = vld [vmem:[#allocation18_spill] sm:$0xff]  ;;  %v2906_v57 = vld [vmem:[#allocation16_spill] sm:$0xff]  ;;  %2916 = vst [vmem:[#allocation32_spill] sm:$0xff] %v2139_v23  ;;  %s813_s8 = sshra.s32 %s1749_s23, 3  ;;  %vm1217_vm1 = vcmask 785408  }
 0x110   : >> { %v2907_v56 = vld [vmem:[#allocation15_spill] sm:$0xff]  ;;  %v2908_v55 = vld [vmem:[#allocation14_spill] sm:$0xff]  ;;  %v2909_v7 = vld [vmem:[#allocation28_spill] sm:$0xff]  ;;  %2917 = vst [vmem:[#allocation33_spill] sm:$0xff] %v2143_v24  ;;  %s1854_s9 = sshll.u32 %s813_s8, 5  ;;  %s1405_s13 = sld [smem:[#allocation3 + %s2151_s7]] }
 0x111   : >> { %v2910_v6 = vld [vmem:[#allocation27_spill] sm:$0xff]  ;;  %v2911_v3 = vld [vmem:[#allocation26_spill] sm:$0xff]  ;;  %v2912_v2 = vld [vmem:[#allocation25_spill] sm:$0xff]  ;;  %2918 = vst [vmem:[#allocation34_spill] sm:$0xff] %v2147_v25  ;;  %s817_s14 = scalar_lea.vmem [#allocation2], %s1854_s9 }
 0x112   : >> { %v2913_v1 = vld [vmem:[#allocation24_spill] sm:$0xff]  ;;  %v2914_v0 = vld [vmem:[#allocation23_spill] sm:$0xff] }
 0x114   : >> { %v822_v26 = vld [vmem:[%s817_s14 + $0x20] sm:$0xff]  ;;  %v823_v27 = vld [vmem:[%s817_s14 + $0x28] sm:$0xff]  ;;  %v824_v30 = vld [vmem:[%s817_s14 + $0x30] sm:$0xff] }
 0x115   : >> { %v818_v28 = vld [vmem:[%s817_s14] sm:$0xff]  ;;  %883 = vmatpush.msra.mxu0 %v822_v26  ;;  %942 = vmatpush.msra.mxu1 %v823_v27  ;;  %v819_v29 = vld [vmem:[%s817_s14 + $0x8] sm:$0xff]  ;;  %v825_v31 = vld [vmem:[%s817_s14 + $0x38] sm:$0xff] }
 0x116   : >> { %1001 = vmatpush.msra.mxu2 %v824_v30  ;;  %1060 = vmatpush.msra.mxu3 %v825_v31  ;;  %v820_v32 = vld [vmem:[%s817_s14 + $0x10] sm:$0xff]  ;;  %v821_v33 = vld [vmem:[%s817_s14 + $0x18] sm:$0xff] }
 0x117   : >> { %884 = vmatpush.msra.mxu0 %v818_v28  ;;  %943 = vmatpush.msra.mxu1 %v819_v29 }
 0x118   : >> { %1752 = vmatmul.msk.f32.vlgmr.msra.gmra.mxu0 %vm826_vm0, %v2908_v55  ;;  %1766 = vmatmul.msk.f32.vlgmr.msra.gmra.mxu1 %vm826_vm0, %v2908_v55 }
 0x119   : >> { %1002 = vmatpush.msra.mxu2 %v820_v32  ;;  %1061 = vmatpush.msra.mxu3 %v821_v33 }
 0x11a   : >> { %1780 = vmatmul.msk.f32.vlgmr.msra.gmra.mxu2 %vm826_vm0, %v2908_v55  ;;  %1794 = vmatmul.msk.f32.vlgmr.msra.gmra.mxu3 %vm826_vm0, %v2908_v55 }
 0x120   : >> { %1753 = vmatmul.msk.f32.gmra.mxu0 %vm826_vm0, %v2907_v56  ;;  %1767 = vmatmul.msk.f32.gmra.mxu1 %vm826_vm0, %v2907_v56 }
 0x122   : >> { %1781 = vmatmul.msk.f32.gmra.mxu2 %vm826_vm0, %v2907_v56  ;;  %1795 = vmatmul.msk.f32.gmra.mxu3 %vm826_vm0, %v2907_v56 }
 0x128   : >> { %1754 = vmatmul.msk.f32.gmra.mxu0 %vm826_vm0, %v2906_v57  ;;  %1768 = vmatmul.msk.f32.gmra.mxu1 %vm826_vm0, %v2906_v57 }
 0x12a   : >> { %1782 = vmatmul.msk.f32.gmra.mxu2 %vm826_vm0, %v2906_v57  ;;  %1796 = vmatmul.msk.f32.gmra.mxu3 %vm826_vm0, %v2906_v57 }
 0x130   : >> { %1755 = vmatmul.msk.f32.gmra.mxu0 %vm826_vm0, %v2905_v59  ;;  %1769 = vmatmul.msk.f32.gmra.mxu1 %vm826_vm0, %v2905_v59 }
 0x132   : >> { %1783 = vmatmul.msk.f32.gmra.mxu2 %vm826_vm0, %v2905_v59  ;;  %1797 = vmatmul.msk.f32.gmra.mxu3 %vm826_vm0, %v2905_v59 }
 0x138   : >> { %1756 = vmatmul.msk.f32.gmra.mxu0 %vm826_vm0, %v2904_v60  ;;  %1770 = vmatmul.msk.f32.gmra.mxu1 %vm826_vm0, %v2904_v60 }
 0x13a   : >> { %1784 = vmatmul.msk.f32.gmra.mxu2 %vm826_vm0, %v2904_v60  ;;  %1798 = vmatmul.msk.f32.gmra.mxu3 %vm826_vm0, %v2904_v60 }
 0x140   : >> { %1757 = vmatmul.msk.f32.gmra.mxu0 %vm826_vm0, %v2903_v61  ;;  %1771 = vmatmul.msk.f32.gmra.mxu1 %vm826_vm0, %v2903_v61 }
 0x142   : >> { %1785 = vmatmul.msk.f32.gmra.mxu2 %vm826_vm0, %v2903_v61  ;;  %1799 = vmatmul.msk.f32.gmra.mxu3 %vm826_vm0, %v2903_v61 }
 0x148   : >> { %1758 = vmatmul.msk.f32.gmra.mxu0 %vm826_vm0, %v2902_v62  ;;  %1772 = vmatmul.msk.f32.gmra.mxu1 %vm826_vm0, %v2902_v62 }
 0x14a   : >> { %1786 = vmatmul.msk.f32.gmra.mxu2 %vm826_vm0, %v2902_v62  ;;  %1800 = vmatmul.msk.f32.gmra.mxu3 %vm826_vm0, %v2902_v62 }
 0x150   : >> { %1759 = vmatmul.msk.f32.gmra.mxu0 %vm826_vm0, %v2901_v63  ;;  %1773 = vmatmul.msk.f32.gmra.mxu1 %vm826_vm0, %v2901_v63 }
 0x152   : >> { %1787 = vmatmul.msk.f32.gmra.mxu2 %vm826_vm0, %v2901_v63  ;;  %1801 = vmatmul.msk.f32.gmra.mxu3 %vm826_vm0, %v2901_v63 }
 0x158   : >> { %1760 = vmatmul.msk.f32.gmra.mxu0 %vm826_vm0, %v2914_v0  ;;  %1774 = vmatmul.msk.f32.gmra.mxu1 %vm826_vm0, %v2914_v0 }
 0x15a   : >> { %1788 = vmatmul.msk.f32.gmra.mxu2 %vm826_vm0, %v2914_v0  ;;  %1802 = vmatmul.msk.f32.gmra.mxu3 %vm826_vm0, %v2914_v0 }
 0x160   : >> { %1761 = vmatmul.msk.f32.gmra.mxu0 %vm826_vm0, %v2913_v1  ;;  %1775 = vmatmul.msk.f32.gmra.mxu1 %vm826_vm0, %v2913_v1 }
 0x162   : >> { %1789 = vmatmul.msk.f32.gmra.mxu2 %vm826_vm0, %v2913_v1  ;;  %1803 = vmatmul.msk.f32.gmra.mxu3 %vm826_vm0, %v2913_v1 }
 0x168   : >> { %1762 = vmatmul.msk.f32.gmra.mxu0 %vm826_vm0, %v2912_v2  ;;  %1776 = vmatmul.msk.f32.gmra.mxu1 %vm826_vm0, %v2912_v2 }
 0x16a   : >> { %1790 = vmatmul.msk.f32.gmra.mxu2 %vm826_vm0, %v2912_v2  ;;  %1804 = vmatmul.msk.f32.gmra.mxu3 %vm826_vm0, %v2912_v2 }
 0x170   : >> { %1763 = vmatmul.msk.f32.gmra.mxu0 %vm826_vm0, %v2911_v3  ;;  %1777 = vmatmul.msk.f32.gmra.mxu1 %vm826_vm0, %v2911_v3 }
 0x172   : >> { %1791 = vmatmul.msk.f32.gmra.mxu2 %vm826_vm0, %v2911_v3  ;;  %1805 = vmatmul.msk.f32.gmra.mxu3 %vm826_vm0, %v2911_v3 }
 0x178   : >> { %1764 = vmatmul.msk.f32.gmra.mxu0 %vm826_vm0, %v2910_v6  ;;  %1778 = vmatmul.msk.f32.gmra.mxu1 %vm826_vm0, %v2910_v6 }
 0x17a   : >> { %1792 = vmatmul.msk.f32.gmra.mxu2 %vm826_vm0, %v2910_v6  ;;  %1806 = vmatmul.msk.f32.gmra.mxu3 %vm826_vm0, %v2910_v6 }
 0x180   : >> { %1765 = vmatmul.msk.f32.gmra.mxu0 %vm826_vm0, %v2909_v7  ;;  %1779 = vmatmul.msk.f32.gmra.mxu1 %vm826_vm0, %v2909_v7 }
 0x182   : >> { %1793 = vmatmul.msk.f32.gmra.mxu2 %vm826_vm0, %v2909_v7  ;;  %1807 = vmatmul.msk.f32.gmra.mxu3 %vm826_vm0, %v2909_v7 }
 0x195   : >> { %v886_v34 = vpop.f32.mrf.mxu0  ;;  %v945_v35 = vpop.f32.mrf.mxu1 }
 0x196   : >> { %v2602_v38 = vmax.f32 %v886_v34, 0.0  ;;  %v2604_v39 = vmax.f32 %v945_v35, 0.0 }
 0x198   : >> { %v1161_v46 = vmul.f32 %v2602_v38, %v2602_v38  ;;  %v1162_v47 = vmul.f32 %v2604_v39, %v2604_v39 }
 0x19d   : >> { %v889_v36 = vpop.f32.mrf.mxu0  ;;  %v948_v37 = vpop.f32.mrf.mxu1 }
 0x19e   : >> { %v2606_v40 = vmax.f32 %v889_v36, 0.0  ;;  %v2608_v41 = vmax.f32 %v948_v37, 0.0  ;;  %v2610_v42 = vpop.f32.mrf.mxu2  ;;  %v2612_v43 = vpop.f32.mrf.mxu3 }
 0x1a0   : >> { %v1165_v44 = vmul.f32 %v2606_v40, %v2606_v40  ;;  %v1166_v45 = vmul.f32 %v2608_v41, %v2608_v41 }
 0x1a2   : >> { %1221 = vmatpush.msrb.mxu0 %v1165_v44  ;;  %1261 = vmatpush.msrb.mxu2 %v1166_v45 }
 0x1a4   : >> { %1222 = vmatpush.msrb.mxu0 %v1161_v46  ;;  %1262 = vmatpush.msrb.mxu2 %v1162_v47 }
 0x1a5   : >> { %v2622_v48 = vpop.f32.mrf.mxu0  ;;  %v2624_v49 = vpop.f32.mrf.mxu1 }
 0x1a6   : >> { %v2626_v50 = vpop.f32.mrf.mxu2  ;;  %v2628_v51 = vpop.f32.mrf.mxu3 }
 0x1ad   : >> { %v2630_v52 = vpop.f32.mrf.mxu0  ;;  %v2632_v53 = vpop.f32.mrf.mxu1 }
 0x1ae   : >> { %v2634_v54 = vpop.f32.mrf.mxu2  ;;  %v2636_v4 = vpop.f32.mrf.mxu3 }
 0x1af   : >> { %2919 = vst [vmem:[#allocation35_spill] sm:$0xff] %v2636_v4 }
 0x1b5   : >> { %v2638_v5 = vpop.f32.mrf.mxu0  ;;  %v2640_v9 = vpop.f32.mrf.mxu1 }
 0x1b6   : >> { %v2642_v10 = vpop.f32.mrf.mxu2  ;;  %v2644_v12 = vpop.f32.mrf.mxu3 }
 0x1bd   : >> { %v2646_v13 = vpop.f32.mrf.mxu0  ;;  %v2648_v14 = vpop.f32.mrf.mxu1 }
 0x1be   : >> { %v2650_v15 = vpop.f32.mrf.mxu2  ;;  %v2652_v16 = vpop.f32.mrf.mxu3 }
 0x1c5   : >> { %v2654_v17 = vpop.f32.mrf.mxu0  ;;  %v2656_v18 = vpop.f32.mrf.mxu1 }
 0x1c6   : >> { %v2658_v19 = vpop.f32.mrf.mxu2  ;;  %v2660_v20 = vpop.f32.mrf.mxu3 }
 0x1cd   : >> { %v907_v21 = vpop.f32.mrf.mxu0  ;;  %v2662_v26 = vpop.f32.mrf.mxu1 }
 0x1ce   : >> { %v2664_v27 = vpop.f32.mrf.mxu2  ;;  %v2666_v28 = vpop.f32.mrf.mxu3 }
 0x1d5   : >> { %v910_v29 = vpop.f32.mrf.mxu0  ;;  %v969_v30 = vpop.f32.mrf.mxu1 }
 0x1d6   : >> { %v2668_v31 = vpop.f32.mrf.mxu2  ;;  %v2670_v32 = vpop.f32.mrf.mxu3 }
 0x1dd   : >> { %v913_v33 = vpop.f32.mrf.mxu0  ;;  %v972_v34 = vpop.f32.mrf.mxu1 }
 0x1de   : >> { %v2672_v35 = vpop.f32.mrf.mxu2  ;;  %v2674_v36 = vpop.f32.mrf.mxu3  ;;  %v1141_v4 = vmax.f32 %v913_v33, 0.0 }
 0x1e5   : >> { %v916_v37 = vpop.f32.mrf.mxu0  ;;  %v975_v44 = vpop.f32.mrf.mxu1 }
 0x1e6   : >> { %v2676_v45 = vpop.f32.mrf.mxu2  ;;  %v2678_v46 = vpop.f32.mrf.mxu3  ;;  %v1145_v25 = vmax.f32 %v916_v37, 0.0  ;;  %v1146_v11 = vmax.f32 %v975_v44, 0.0  ;;  %v1117_v37 = vmax.f32 %v2630_v52, 0.0  ;;  %v1118_v44 = vmax.f32 %v2632_v53, 0.0 }
 0x1e8   : >> { %v1173_v53 = vmul.f32 %v1117_v37, %v1117_v37 }
 0x1ed   : >> { %v919_v47 = vpop.f32.mrf.mxu0  ;;  %v978_v0 = vpop.f32.mrf.mxu1 }
 0x1ee   : >> { %v2680_v1 = vpop.f32.mrf.mxu2  ;;  %v2682_v2 = vpop.f32.mrf.mxu3  ;;  %v1149_v63 = vmax.f32 %v919_v47, 0.0  ;;  %v1150_v24 = vmax.f32 %v978_v0, 0.0  ;;  %v1201_v0 = vmul.f32 %v1145_v25, %v1145_v25  ;;  %v1113_v47 = vmax.f32 %v2622_v48, 0.0 }
 0x1ef   : >> { %v1174_v48 = vmul.f32 %v1118_v44, %v1118_v44 }
 0x1f5   : >> { %v922_v3 = vpop.f32.mrf.mxu0  ;;  %v981_v6 = vpop.f32.mrf.mxu1 }
 0x1f6   : >> { %v2684_v7 = vpop.f32.mrf.mxu2  ;;  %v2686_v55 = vpop.f32.mrf.mxu3  ;;  %v1153_v59 = vmax.f32 %v922_v3, 0.0  ;;  %v1154_v62 = vmax.f32 %v981_v6, 0.0  ;;  %v1206_v3 = vmul.f32 %v1150_v24, %v1150_v24 }
 0x1f8   : >> { %v1209_v58 = vmul.f32 %v1153_v59, %v1153_v59  ;;  %v1210_v8 = vmul.f32 %v1154_v62, %v1154_v62 }
 0x1fd   : >> { %v925_v56 = vpop.f32.mrf.mxu0  ;;  %v984_v57 = vpop.f32.mrf.mxu1 }
 0x1fe   : >> { %v1157_v60 = vmax.f32 %v925_v56, 0.0  ;;  %v1158_v61 = vmax.f32 %v984_v57, 0.0  ;;  %v1205_v56 = vmul.f32 %v1149_v63, %v1149_v63  ;;  %v1142_v57 = vmax.f32 %v972_v34, 0.0  ;;  %v1040_v6 = vpop.f32.mrf.mxu2 }
 0x200   : >> { %1223 = vmatpush.msrb.mxu0 %v1157_v60  ;;  %1263 = vmatpush.msrb.mxu2 %v1158_v61  ;;  %v1213_v22 = vmul.f32 %v1157_v60, %v1157_v60  ;;  %v1214_v23 = vmul.f32 %v1158_v61, %v1158_v61  ;;  %v2688_v60 = vpop.f32.mrf.mxu3  ;;  %v1137_v61 = vmax.f32 %v910_v29, 0.0 }
 0x202   : >> { %1224 = vmatpush.msrb.mxu0 %v1153_v59  ;;  %1245 = vmatpush.msrb.mxu1 %v1213_v22  ;;  %v1138_v59 = vmax.f32 %v969_v30, 0.0  ;;  %v1202_v22 = vmul.f32 %v1146_v11, %v1146_v11 }
 0x203   : >> { %1264 = vmatpush.msrb.mxu2 %v1154_v62  ;;  %1285 = vmatpush.msrb.mxu3 %v1214_v23  ;;  %v1133_v62 = vmax.f32 %v907_v21, 0.0  ;;  %v1129_v23 = vmax.f32 %v2654_v17, 0.0  ;;  %v1126_v21 = vmax.f32 %v2648_v14, 0.0  ;;  %v1121_v17 = vmax.f32 %v2638_v5, 0.0 }
 0x204   : >> { %1225 = vmatpush.msrb.mxu0 %v1149_v63  ;;  %1246 = vmatpush.msrb.mxu1 %v1209_v58  ;;  %v1197_v58 = vmul.f32 %v1141_v4, %v1141_v4  ;;  %v1134_v63 = vmax.f32 %v2662_v26, 0.0  ;;  %v1194_v29 = vmul.f32 %v1138_v59, %v1138_v59 }
 0x205   : >> { %1265 = vmatpush.msrb.mxu2 %v1150_v24  ;;  %1286 = vmatpush.msrb.mxu3 %v1210_v8  ;;  %v1198_v8 = vmul.f32 %v1142_v57, %v1142_v57  ;;  %v1193_v24 = vmul.f32 %v1137_v61, %v1137_v61  ;;  %v1185_v30 = vmul.f32 %v1129_v23, %v1129_v23 }
 0x206   : >> { %1226 = vmatpush.msrb.mxu0 %v1145_v25  ;;  %1247 = vmatpush.msrb.mxu1 %v1205_v56  ;;  %v1130_v25 = vmax.f32 %v2656_v18, 0.0  ;;  %v1190_v26 = vmul.f32 %v1134_v63, %v1134_v63  ;;  %v1122_v18 = vmax.f32 %v2640_v9, 0.0  ;;  %v1043_v34 = vpop.f32.mrf.mxu2  ;;  %v1182_v5 = vmul.f32 %v1126_v21, %v1126_v21 }
 0x207   : >> { %1266 = vmatpush.msrb.mxu2 %v1146_v11  ;;  %1287 = vmatpush.msrb.mxu3 %v1206_v3  ;;  %v1125_v11 = vmax.f32 %v2646_v13, 0.0  ;;  %v2700_v9 = vmax.f32 %v1043_v34, 0.0  ;;  %v1114_v3 = vmax.f32 %v2624_v49, 0.0 }
 0x208   : >> { %1227 = vmatpush.msrb.mxu0 %v1141_v4  ;;  %1248 = vmatpush.msrb.mxu1 %v1201_v0  ;;  %v1189_v4 = vmul.f32 %v1133_v62, %v1133_v62  ;;  %v1186_v33 = vmul.f32 %v1130_v25, %v1130_v25  ;;  %v1102_v13 = vpop.f32.mrf.mxu3  ;;  %v1178_v52 = vmul.f32 %v1122_v18, %v1122_v18  ;;  %v2708_v0 = vmax.f32 %v2626_v50, 0.0 }
 0x209   : >> { %1267 = vmatpush.msrb.mxu2 %v1142_v57  ;;  %1288 = vmatpush.msrb.mxu3 %v1202_v22  ;;  %v1181_v14 = vmul.f32 %v1125_v11, %v1125_v11  ;;  %v2702_v56 = vmax.f32 %v1102_v13, 0.0  ;;  %v1177_v57 = vmul.f32 %v1121_v17, %v1121_v17  ;;  %v1169_v22 = vmul.f32 %v1113_v47, %v1113_v47 }
 0x20a   : >> { %1228 = vmatpush.msrb.mxu0 %v1137_v61  ;;  %1249 = vmatpush.msrb.mxu1 %v1197_v58  ;;  %v2705_v61 = vmax.f32 %v1040_v6, 0.0  ;;  %v2715_v6 = vmax.f32 %v2628_v51, 0.0  ;;  %v1170_v58 = vmul.f32 %v1114_v3, %v1114_v3  ;;  %v2719_v50 = vmax.f32 %v2610_v42, 0.0 }
 0x20b   : >> { %1268 = vmatpush.msrb.mxu2 %v1138_v59  ;;  %1289 = vmatpush.msrb.mxu3 %v1198_v8  ;;  %v1215_v59 = vmul.f32 %v2700_v9, %v2700_v9  ;;  %v1216_v49 = vmul.f32 %v2702_v56, %v2702_v56  ;;  %v1152_v51 = vmax.f32 %v2686_v55, 0.0  ;;  %v1167_v42 = vmul.f32 %v2708_v0, %v2708_v0 }
 0x20c   : >> { %1229 = vmatpush.msrb.mxu0 %v1133_v62  ;;  %1250 = vmatpush.msrb.mxu1 %v1193_v24  ;;  %v1156_v62 = vmax.f32 %v2688_v60, 0.0  ;;  %v1211_v8 = vmul.f32 %v2705_v61, %v2705_v61  ;;  %v1147_v60 = vmax.f32 %v2680_v1, 0.0  ;;  %v1163_v55 = vmul.f32 %v2719_v50, %v2719_v50 }
 0x20d   : >> { %1269 = vmatpush.msrb.mxu2 %v1134_v63  ;;  %1290 = vmatpush.msrb.mxu3 %v1194_v29  ;;  %v1151_v63 = vmax.f32 %v2684_v7, 0.0  ;;  %v1168_v7 = vmul.f32 %v2715_v6, %v2715_v6  ;;  %v1208_v29 = vmul.f32 %v1152_v51, %v1152_v51 }
 0x20e   : >> { %1230 = vmatpush.msrb.mxu0 %v1129_v23  ;;  %1251 = vmatpush.msrb.mxu1 %v1189_v4  ;;  %v2726_v23 = vmax.f32 %v2612_v43, 0.0  ;;  %v1212_v24 = vmul.f32 %v1156_v62, %v1156_v62 }
 0x20f   : >> { %1270 = vmatpush.msrb.mxu2 %v1130_v25  ;;  %1291 = vmatpush.msrb.mxu3 %v1190_v26  ;;  %v1207_v43 = vmul.f32 %v1151_v63, %v1151_v63  ;;  %v1144_v25 = vmax.f32 %v2678_v46, 0.0  ;;  %v1136_v46 = vmax.f32 %v2670_v32, 0.0  ;;  %v1128_v32 = vmax.f32 %v2660_v20, 0.0 }
 0x210   : >> { %1231 = vmatpush.msrb.mxu0 %v1125_v11  ;;  %1252 = vmatpush.msrb.mxu1 %v1185_v30  ;;  %v1164_v1 = vmul.f32 %v2726_v23, %v2726_v23  ;;  %v1120_v20 = vmax.f32 %v2644_v12, 0.0 }
 0x211   : >> { %1271 = vmatpush.msrb.mxu2 %v1126_v21  ;;  %1292 = vmatpush.msrb.mxu3 %v1186_v33  ;;  %v1200_v21 = vmul.f32 %v1144_v25, %v1144_v25 }
 0x212   : >> { %1232 = vmatpush.msrb.mxu0 %v1121_v17  ;;  %1253 = vmatpush.msrb.mxu1 %v1181_v14 }
 0x213   : >> { %1272 = vmatpush.msrb.mxu2 %v1122_v18  ;;  %1293 = vmatpush.msrb.mxu3 %v1182_v5  ;;  %v1192_v18 = vmul.f32 %v1136_v46, %v1136_v46 }
 0x214   : >> { %1233 = vmatpush.msrb.mxu0 %v1117_v37  ;;  %1254 = vmatpush.msrb.mxu1 %v1177_v57  ;;  %v1184_v37 = vmul.f32 %v1128_v32, %v1128_v32 }
 0x215   : >> { %1273 = vmatpush.msrb.mxu2 %v1118_v44  ;;  %1294 = vmatpush.msrb.mxu3 %v1178_v52  ;;  %v2920_v44 = vld [vmem:[#allocation35_spill] sm:$0xff] }
 0x216   : >> { %1234 = vmatpush.msrb.mxu0 %v1113_v47  ;;  %1255 = vmatpush.msrb.mxu1 %v1173_v53 }
 0x217   : >> { %1274 = vmatpush.msrb.mxu2 %v1114_v3  ;;  %1295 = vmatpush.msrb.mxu3 %v1174_v48 }
 0x218   : >> { %1235 = vmatpush.msrb.mxu0 %v2606_v40  ;;  %1256 = vmatpush.msrb.mxu1 %v1169_v22  ;;  %v1148_v40 = vmax.f32 %v2682_v2, 0.0  ;;  %v1139_v2 = vmax.f32 %v2672_v35, 0.0  ;;  %v1131_v35 = vmax.f32 %v2664_v27, 0.0  ;;  %v1123_v27 = vmax.f32 %v2650_v15, 0.0 }
 0x219   : >> { %1275 = vmatpush.msrb.mxu2 %v2608_v41  ;;  %1296 = vmatpush.msrb.mxu3 %v1170_v58  ;;  %v1143_v41 = vmax.f32 %v2676_v45, 0.0  ;;  %v1135_v45 = vmax.f32 %v2668_v31, 0.0  ;;  %v1127_v31 = vmax.f32 %v2658_v19, 0.0  ;;  %v1119_v19 = vmax.f32 %v2642_v10, 0.0 }
 0x21a   : >> { %1325 = vmatpush.msra.mxu1 %v1215_v59  ;;  %1236 = vmatpush.msrb.mxu0 %v2602_v38  ;;  %v1203_v38 = vmul.f32 %v1147_v60, %v1147_v60  ;;  %v1204_v11 = vmul.f32 %v1148_v40, %v1148_v40  ;;  %v1195_v26 = vmul.f32 %v1139_v2, %v1139_v2  ;;  %v1115_v15 = vmax.f32 %v2634_v54, 0.0  ;;  %v2921_v54 = vld [vmem:[#allocation29_spill] sm:$0xff] }
 0x21b   : >> { %1365 = vmatpush.msra.mxu3 %v1216_v49  ;;  %1276 = vmatpush.msrb.mxu2 %v2604_v39  ;;  %v1140_v39 = vmax.f32 %v2674_v36, 0.0  ;;  %v1199_v4 = vmul.f32 %v1143_v41, %v1143_v41  ;;  %v1132_v36 = vmax.f32 %v2666_v28, 0.0  ;;  %v1191_v30 = vmul.f32 %v1135_v45, %v1135_v45 }
 0x21c   : >> { %1301 = vmatpush.msra.mxu0 %v1167_v42  ;;  %1326 = vmatpush.msra.mxu1 %v1211_v8  ;;  %v1187_v33 = vmul.f32 %v1131_v35, %v1131_v35  ;;  %v1124_v28 = vmax.f32 %v2652_v16, 0.0  ;;  %v1183_v13 = vmul.f32 %v1127_v31, %v1127_v31  ;;  %v1179_v14 = vmul.f32 %v1123_v27, %v1123_v27 }
 0x21d   : >> { %1341 = vmatpush.msra.mxu2 %v1168_v7  ;;  %1366 = vmatpush.msra.mxu3 %v1212_v24  ;;  %v1196_v17 = vmul.f32 %v1140_v39, %v1140_v39  ;;  %v1188_v34 = vmul.f32 %v1132_v36, %v1132_v36  ;;  %v1116_v16 = vmax.f32 %v2920_v44, 0.0  ;;  %v1175_v47 = vmul.f32 %v1119_v19, %v1119_v19 }
 0x21e   : >> { %1302 = vmatpush.msra.mxu0 %v1163_v55  ;;  %1327 = vmatpush.msra.mxu1 %v1207_v43  ;;  %v1180_v5 = vmul.f32 %v1124_v28, %v1124_v28  ;;  %v1176_v10 = vmul.f32 %v1120_v20, %v1120_v20  ;;  %v1171_v12 = vmul.f32 %v1115_v15, %v1115_v15  ;;  %v1406_v8 = vstv %s1405_s13 }
 0x21f   : >> { %1342 = vmatpush.msra.mxu2 %v1164_v1  ;;  %1367 = vmatpush.msra.mxu3 %v1208_v29  ;;  %v1411_v42 = vstv %s2151_s7  ;;  %s807_s7 = sadd.s32 1, %s2151_s7  }
 0x220   : >> { %1303 = vmatpush.msra.mxu0 %v2700_v9  ;;  %1328 = vmatpush.msra.mxu1 %v1203_v38  ;;  %v1172_v9 = vmul.f32 %v1116_v16, %v1116_v16  ;;  %p804_p3 = scmp.ge.s32.totalorder %s807_s7, 4  }
 0x221   : >> { %1343 = vmatpush.msra.mxu2 %v2702_v56  ;;  %1368 = vmatpush.msra.mxu3 %v1204_v11  ;;  %v2922_v56 = vld [vmem:[#allocation30_spill] sm:$0xff]  ;;  %vm1431_vm3 = vcmask (%p804_p3), 1043456   ;;  %s1855_s15 = sshll.u32 (%p804_p3), %s2123_s21, 4  ;;  %s1454_s6 = sshll.u32 (%p804_p3), %s2462_s28, 4  ;;  %s1455_s6 = int_to_ptr.vmem [resolvable:$true] %s1454_s6 }
 0x222   : >> { %1304 = vmatpush.msra.mxu0 %v2705_v61  ;;  %1329 = vmatpush.msra.mxu1 %v1199_v4  ;;  %v2926_v11 = vld [vmem:[#allocation34_spill] sm:$0xff]  ;;  %s1452_s29 = scalar_lea.hbm (%p804_p3), %s2853_s5, %s1855_s15  ;;  %s1439_s11 = scalar_lea.sflag (%p804_p3), [#allocation5], %s2291_s26 }
 0x223   : >> { %1344 = vmatpush.msra.mxu2 %v1156_v62  ;;  %1369 = vmatpush.msra.mxu3 %v1200_v21  ;;  %s1456_s10 = sshll.u32 (%p804_p3), %s1452_s29, 4  ;;  %s2045_s7 = scalar_lea.hbm (%p804_p3), %s2853_s5, 32  ;;  %s1457_s10 = int_to_ptr.hbm [resolvable:$true] %s1456_s10 }
 0x224   : >> { %1305 = vmatpush.msra.mxu0 %v1151_v63  ;;  %1330 = vmatpush.msra.mxu1 %v1195_v26  ;;  %s2039_s17 = sshra.s32 (%p804_p3), %s1457_s10, 4  ;;  %s2040_s17 = int_to_ptr.hbm [resolvable:$true] %s2039_s17 }
 0x225   : >> { %1345 = vmatpush.msra.mxu2 %v1152_v51  ;;  %1370 = vmatpush.msra.mxu3 %v1196_v17  ;;  %s2041_s24 = scalar_lea.hbm (%p804_p3), %s2040_s17, 16  ;;  %p2046_p12 = scmp.lt.s32.totalorder (%p804_p3), %s2040_s17, %s2853_s5 }
 0x226   : >> { %1306 = vmatpush.msra.mxu0 %v1147_v60  ;;  %1331 = vmatpush.msra.mxu1 %v1191_v30  ;;  %p2042_p5 = scmp.ne.s32.totalorder (%p804_p3), %s2040_s17, %s2041_s24  ;;  %p2047_p0 = scmp.lt.s32.totalorder (%p804_p3), %s2045_s7, %s2041_s24 }
 0x227   : >> { %1346 = vmatpush.msra.mxu2 %v1148_v40  ;;  %1371 = vmatpush.msra.mxu3 %v1192_v18 }
 0x228   : >> { %1307 = vmatpush.msra.mxu0 %v1143_v41  ;;  %1332 = vmatpush.msra.mxu1 %v1187_v33  ;;  %v2923_v41 = vld [vmem:[#allocation17_spill] sm:$0xff]  ;;  %p2043_p7 = pnand (%p804_p3), %p2042_p5, %p2238_p8  ;;  %p2048_p1 = por (%p804_p3), %p2047_p0, %p2046_p12 }
 0x229   : >> { %1347 = vmatpush.msra.mxu2 %v1144_v25  ;;  %1372 = vmatpush.msra.mxu3 %v1188_v34  ;;  %vm2780_vm2 = vcmp.eq.s32.totalorder %v2923_v41, %v1411_v42 }
 0x22a   : >> { %1308 = vmatpush.msra.mxu0 %v1139_v2  ;;  %1333 = vmatpush.msra.mxu1 %v1183_v13  ;;  %v2929_v13 = vld [vmem:[#allocation31_spill] sm:$0xff]  ;;  %p2044_p11 = pneg (%p804_p3), %p2043_p7 }
 0x22b   : >> { %1348 = vmatpush.msra.mxu2 %v1140_v39  ;;  %1373 = vmatpush.msra.mxu3 %v1184_v37 }
 0x22c   : >> { %1309 = vmatpush.msra.mxu0 %v1135_v45  ;;  %1334 = vmatpush.msra.mxu1 %v1179_v14  ;;  %p2049_p2 = pnand (%p804_p3), %p2048_p1, %p2044_p11 }
 0x22d   : >> { %1349 = vmatpush.msra.mxu2 %v1136_v46  ;;  %1374 = vmatpush.msra.mxu3 %v1180_v5 }
 0x22e   : >> { %1310 = vmatpush.msra.mxu0 %v1131_v35  ;;  %1335 = vmatpush.msra.mxu1 %v1175_v47 }
 0x22f   : >> { %1350 = vmatpush.msra.mxu2 %v1132_v36  ;;  %1375 = vmatpush.msra.mxu3 %v1176_v10  ;;  %v2927_v36 = vld [vmem:[#allocation33_spill] sm:$0xff] }
 0x230   : >> { %1311 = vmatpush.msra.mxu0 %v1127_v31  ;;  %1336 = vmatpush.msra.mxu1 %v1171_v12 }
 0x231   : >> { %1351 = vmatpush.msra.mxu2 %v1128_v32  ;;  %1376 = vmatpush.msra.mxu3 %v1172_v9 }
 0x232   : >> { %1312 = vmatpush.msra.mxu0 %v1123_v27  ;;  %1277 = vmatmul.f32.vlgmr.msrb.gmra.mxu2 %v2921_v54  ;;  %v2928_v27 = vld [vmem:[#allocation32_spill] sm:$0xff] }
 0x233   : >> { %1352 = vmatpush.msra.mxu2 %v1124_v28  ;;  %1809 = vmatmul.msk.f32.vlgmr.msrb.gmra.mxu3 %vm1217_vm1, %v2922_v56 }
 0x234   : >> { %1313 = vmatpush.msra.mxu0 %v1119_v19  ;;  %1808 = vmatmul.msk.f32.vlgmr.msrb.gmra.mxu1 %vm1217_vm1, %v2922_v56 }
 0x235   : >> { %1353 = vmatpush.msra.mxu2 %v1120_v20  ;;  %1237 = vmatmul.f32.vlgmr.msrb.gmra.mxu0 %v2921_v54 }
 0x236   : >> { %1314 = vmatpush.msra.mxu0 %v1115_v15 }
 0x237   : >> { %1354 = vmatpush.msra.mxu2 %v1116_v16 }
 0x238   : >> { %1315 = vmatpush.msra.mxu0 %v2708_v0 }
 0x239   : >> { %1355 = vmatpush.msra.mxu2 %v2715_v6 }
 0x23a   : >> { %1316 = vmatpush.msra.mxu0 %v2719_v50 }
 0x23b   : >> { %1356 = vmatpush.msra.mxu2 %v2726_v23  ;;  %1811 = vmatmul.msk.f32.vlgmr.msra.gmra.mxu3 %vm1217_vm1, %v2922_v56 }
 0x23c   : >> { %1357 = vmatmul.f32.vlgmr.msra.gmra.mxu2 %v2921_v54  ;;  %1810 = vmatmul.msk.f32.vlgmr.msra.gmra.mxu1 %vm1217_vm1, %v2922_v56 }
 0x23d   : >> { %1317 = vmatmul.f32.vlgmr.msra.gmra.mxu0 %v2921_v54 }
 0x2b1   : >> { %v1258_v57 = vpop.f32.mrf.mxu1 }
 0x2b2   : >> { %v1238_v3 = vpop.f32.mrf.mxu0 }
 0x2b3   : >> { %v1259_v52 = vadd.f32 %v1258_v57, %v1238_v3 }
 0x2b5   : >> { %v1381_v61 = vadd.f32 1e-16, %v1259_v52  ;;  %v1278_v53 = vpop.f32.mrf.mxu2 }
 0x2b6   : >> { %v1298_v48 = vpop.f32.mrf.mxu3 }
 0x2b7   : >> { %1972 = vrcp.f32 %v1381_v61  ;;  %v1299_v0 = vadd.f32 %v1298_v48, %v1278_v53 }
 0x2b9   : >> { %v1382_v59 = vadd.f32 1e-16, %v1299_v0  ;;  %v1338_v49 = vpop.f32.mrf.mxu1 }
 0x2ba   : >> { %v1318_v22 = vpop.f32.mrf.mxu0 }
 0x2bb   : >> { %1974 = vrcp.f32 %v1382_v59  ;;  %v1339_v6 = vadd.f32 %v1338_v49, %v1318_v22 }
 0x2bd   : >> { %v1973_v62 = vpop.eup %1972  ;;  %v1383_v58 = vadd.f32 1e-16, %v1339_v6 }
 0x2be   : >> { %v1393_v50 = vrot.slane %v1973_v62, 7  ;;  %v1378_v63 = vpop.f32.mrf.mxu3 }
 0x2bf   : >> { %1976 = vrcp.f32 %v1383_v58  ;;  %v1358_v23 = vpop.f32.mrf.mxu2 }
 0x2c0   : >> { %v1401_v51 = vmul.f32 %v1393_v50, %v1259_v52  ;;  %v1379_v60 = vadd.f32 %v1378_v63, %v1358_v23 }
 0x2c1   : >> { %v1975_v7 = vpop.eup %1974 }
 0x2c2   : >> { %v1407_v40 = vadd.f32 %v1406_v8, %v1401_v51  ;;  %v1394_v24 = vrot.slane %v1975_v7, 7  ;;  %v1384_v55 = vadd.f32 1e-16, %v1379_v60 }
 0x2c4   : >> { %v1413_v1 = vperm.slane %v1407_v40, 1  ;;  %v1402_v25 = vmul.f32 %v1394_v24, %v1299_v0  ;;  %1978 = vrcp.f32 %v1384_v55 }
 0x2c5   : >> { %v1977_v29 = vpop.eup %1976 }
 0x2c6   : >> { %v1417_v2 = vsel %vm2780_vm2, %v1413_v1, 0.0  ;;  %v1408_v38 = vadd.f32 %v1406_v8, %v1402_v25  ;;  %v1395_v39 = vrot.slane %v1977_v29, 7 }
 0x2c7   : >> { %v1421_v45 = vadd.f32 %v2926_v11, %v1417_v2  }
 0x2c8   : >> { %v1414_v4 = vperm.slane %v1408_v38, 1  ;;  %v1403_v46 = vmul.f32 %v1395_v39, %v1339_v6 }
 0x2c9   : >> { %v2933_v25 = vmov %v1421_v45 }
 0x2ca   : >> { %v1979_v21 = vpop.eup %1978  ;;  %v1418_v35 = vsel %vm2780_vm2, %v1414_v4, 0.0  ;;  %v1409_v26 = vadd.f32 %v1406_v8, %v1403_v46 }
 0x2cb   : >> { %v1422_v17 = vadd.f32 %v2927_v36, %v1418_v35   ;;  %v1396_v31 = vrot.slane %v1979_v21, 7 }
 0x2cc   : >> { %v1415_v30 = vperm.slane %v1409_v26, 1 }
 0x2cd   : >> { %v1404_v32 = vmul.f32 %v1396_v31, %v1379_v60  ;;  %v2932_v24 = vmov %v1422_v17  ;;  %v1429_v37 = vrot.slane (%p804_p3), %v1422_v17, 4 }
 0x2ce   : >> { %v1419_v18 = vsel %vm2780_vm2, %v1415_v30, 0.0 }
 0x2cf   : >> { %v1423_v33 = vadd.f32 %v2928_v27, %v1419_v18   ;;  %v1410_v28 = vadd.f32 %v1406_v8, %v1404_v32  ;;  %v1432_v14 = vsel (%p804_p3), %vm1431_vm3, %v1421_v45, %v1429_v37 }
 0x2d0   : > { %1436 = vst [vmem:[%s2462_s28] sm:$0xff] (%p804_p3), %v1432_v14 }
 0x2d1   : >> { %v1416_v34 = vperm.slane %v1410_v28, 1  ;;  %v2931_v23 = vmov %v1423_v33 }
 0x2d2   : > { %806 = sbr.rel (!%p804_p3) target bundleno = 270 (0x10e), region = 109 }
 0x2d3   : >> { %v1420_v19 = vsel %vm2780_vm2, %v1416_v34, 0.0 }
 0x2d4   : >> { %v1424_v20 = vadd.f32 %v2929_v13, %v1420_v19  }
 0x2d6   : >> { %v2930_v22 = vmov %v1424_v20  ;;  %v1430_v15 = vrot.slane (%p804_p3), %v1424_v20, 4 }
 0x2d8   : > { %v1433_v44 = vsel %vm1431_vm3, %v1423_v33, %v1430_v15 }
 0x2d9   : > { %1437 = vst [vmem:[%s2462_s28 + $0x8] sm:$0xff] %v1433_v44 }
 0x2da   : > { %2052 = shalt.err (!%p2049_p2)
}
 0x2db   : > { %1862 = dma.vmem_to_hbm [thread:$0]  (%p2238_p8), %s1455_s6, 256, %s1457_s10, %s1439_s11  }
 0x2dc PF: > { %s2935_s28 = sld [smem:[#allocation12_spill]]  ;;  %s1468_s9 = sand.u32 1, %s2111_s18  }
 0x2dd   : > { %p1873_p4 = pnand %p1597_p13, %p2242_p9  ;;  %s1469_s14 = scalar_lea.sflag [#allocation5], %s1468_s9 }
 0x2df   : > { %p1874_p6 = pneg %p1873_p4 }
 0x2e1   : > { %2106 = dma.done.wait (%p1874_p6), %s1469_s14, 256  }
 0x2e2   : > { %2108 = vsyncadd (%p1874_p6), %s1469_s14, 4294967040  ;;  %s22_s23 = sadd.s32 1, %s2935_s28   ;;  %s2936_s18 = smov %s2115_s19 }
 0x2e3   : > { %p19_p10 = scmp.ge.s32.totalorder %s22_s23, 4   ;;  %s2937_s19 = smov %s2119_s20 }
 0x2e4   : > { %s2938_s20 = smov %s2280_s2  ;;  %s2939_s21 = smov %s2127_s22 }
 0x2e5   : > { %s2940_s22 = smov %s2942_s12  ;;  %21 = sbr.rel (!%p19_p10) target bundleno = 9 (0x9), region = 120 }
 0x2ea   :  { %1475 = vsyncpa [#allocation4], 1 }
 0x2eb   :  { %1477 = vsyncpa [#allocation4 + $0x1], 1 }
 0x2ec   :  { %1478 = vsyncpa [#allocation5], 1 }
 0x2ed   :  { %1480 = vsyncpa [#allocation5 + $0x1], 1 }
 0x2ee   :  { %1481 = vsyncpa [#allocation6], 1 }
 0x2ef   :  { %1483 = vsyncpa [#allocation6 + $0x1], 1 }

</bundles_post_ra>
